<compile_context>
chip_gen: v6e
topology: v6e:2x2x1
jax: 0.10.0
libtpu: 0.0.40
codegen_flags: <defaults>
</compile_context>

<pallas_src>
import functools

import jax
import jax.numpy as jnp
from jax.experimental import pallas as pl
from jax.experimental.pallas import tpu as pltpu

OUT_DIM = 2          # alpha_hidden.shape[0]
HIDDEN = 5           # alpha_hidden.shape[1]
FILTER = 5           # alpha_hidden.shape[2]
NEG_SLOPE = 0.01     # torch.nn.functional.leaky_relu default


def _regnn_bin_kernel(alpha_ref, hp_ref, x_ref, out_ref, *, n_pow):
    # alpha_ref: SMEM f32[OUT_DIM*HIDDEN*FILTER]  flat filter coefficients
    # hp_ref:    VMEM bf16[n_pow, N, N]           stacked (H_s^k)^T, k = 1..n_pow
    # x_ref:     VMEM f32[1, N]                   row-vector node signal
    # out_ref:   VMEM f32[OUT_DIM, N]             lane-dense output
    n = x_ref.shape[1]
    inv_n = 1.0 / n

    x = (x_ref[...] + 1.0) * 0.5                  # reference: x = (x + 1) / 2

    # out_dim / hidden / filter loops are tiny & static -> unrolled at trace
    # time.  x deliberately carries over between output-channel iterations,
    # exactly as in the PyTorch reference.
    for a in range(OUT_DIM):
        for i in range(HIDDEN):
            base = (a * HIDDEN + i) * FILTER
            taps = {0: x}                         # tap j == (H_s^j @ x)^T
            y = alpha_ref[base] * x               # j = 0 term (H_s^0 = I)
            for j in range(1, FILTER):
                src = taps[max(j - n_pow, 0)]     # chain only when j > n_pow
                zj = jnp.dot(src.astype(jnp.bfloat16),
                             hp_ref[min(j, n_pow) - 1],
                             preferred_element_type=jnp.float32)
                taps[j] = zj
                y = y + alpha_ref[base + j] * zj
            # leaky_relu, then x / mean(x), then x - mean(x) (recomputed), all
            # in f32 and exactly as the reference does it.
            x = jnp.where(y >= 0.0, y, NEG_SLOPE * y)
            m = jnp.sum(x, axis=1, keepdims=True) * inv_n
            x = x / m
            m2 = jnp.sum(x, axis=1, keepdims=True) * inv_n
            x = x - m2
        # Store this channel now: the a=0 store retires while a=1 still runs.
        out_ref[pl.ds(a, 1), :] = jax.nn.sigmoid(x)


def _vmem_limit_bytes():
    try:
        cap = int(pltpu.get_tpu_info().vmem_capacity_bytes)
    except Exception:
        cap = 64 << 20                            # conservative (v7x-sized)
    # ~56 MiB on v7x (64 MiB VMEM), ~112 MiB on v5e/v6e (128 MiB VMEM).
    return int(cap - max(8 << 20, cap // 8))


def _pick_num_powers(n, vmem_limit):
    budget = vmem_limit - (4 << 20)               # headroom for x / out / scratch
    for p in range(FILTER - 1, 0, -1):
        if p * n * n * 2 <= budget:               # bf16 stacked operator
            return p
    # TODO(synk): row/column-tiled HBM-streaming fallback (emit_pipeline,
    # Buffered(2-3), reduction axis innermost) for graphs whose single bf16
    # H_s^T exceeds VMEM; for now keep one power resident.
    return 1


def regnn_bin_forward(alpha_hidden, H, x, n_powers=None):
    """alpha_hidden: (OUT_DIM, HIDDEN, FILTER); H: (N, N); x: (N, 1) -> (N, OUT_DIM)."""
    N = H.shape[0]
    vmem_limit = _vmem_limit_bytes()
    if n_powers is None:
        n_powers = _pick_num_powers(N, vmem_limit)
    n_powers = max(1, min(int(n_powers), FILTER - 1))

    alpha_flat = alpha_hidden.reshape(-1).astype(jnp.float32)      # (50,) scalars

    # H_s^T and its powers, computed in f32 (as the reference's matrix_power
    # is), cast to bf16 only for the resident MXU operand.
    hs_t = jnp.transpose((H.astype(jnp.float32) + 1.0) * 0.5)      # (H_s)^T
    pows = [hs_t]
    for _ in range(n_powers - 1):
        pows.append(jnp.dot(pows[-1], hs_t, preferred_element_type=jnp.float32))
    hp = jnp.stack(pows, axis=0).astype(jnp.bfloat16)              # (p, N, N)

    x_row = x.reshape(1, N).astype(jnp.float32)                    # lane-dense row

    out_t = pl.pallas_call(
        functools.partial(_regnn_bin_kernel, n_pow=n_powers),
        out_shape=jax.ShapeDtypeStruct((OUT_DIM, N), jnp.float32),
        in_specs=[
            pl.BlockSpec(memory_space=pltpu.MemorySpace.SMEM),     # alpha scalars
            pl.BlockSpec(memory_space=pltpu.MemorySpace.VMEM),     # stacked powers
            pl.BlockSpec(memory_space=pltpu.MemorySpace.VMEM),     # x row
        ],
        out_specs=pl.BlockSpec(memory_space=pltpu.MemorySpace.VMEM),
        compiler_params=pltpu.CompilerParams(vmem_limit_bytes=vmem_limit),
    )(alpha_flat, hp, x_row)
    return out_t.T                                                 # (N, OUT_DIM)


if __name__ == "__main__":
    key = jax.random.PRNGKey(0)
    k_alpha, k_h, k_x = jax.random.split(key, 3)

    N = 16  # number of graph nodes
    # Same shapes as the PyTorch module: alpha ~ randn(out_dim, hidden, filter).
    alpha_hidden = jax.random.normal(k_alpha, (OUT_DIM, HIDDEN, FILTER), dtype=jnp.float32)
    H = jax.random.normal(k_h, (N, N), dtype=jnp.float32)
    x = jax.random.normal(k_x, (N, 1), dtype=jnp.float32)

    out = regnn_bin_forward(alpha_hidden, H, x)
    out = jax.block_until_ready(out)
    assert out.shape == (N, OUT_DIM) and out.dtype == jnp.float32
    print("KERNEL_OK")
</pallas_src>

<mosaic_0001>
module attributes {stable_mosaic.version = 11 : i64} {
  func.func @_regnn_bin_kernel(%arg0: memref<50xf32, #tpu.memory_space<smem>>, %arg1: memref<4x16x16xbf16, #tpu.memory_space<vmem>>, %arg2: memref<1x16xf32, #tpu.memory_space<vmem>>, %arg3: memref<2x16xf32, #tpu.memory_space<vmem>>) attributes {dimension_semantics = [], scalar_prefetch = 0 : i64, scratch_operands = 0 : i64, tpu.core_type = #tpu.core_type<tc>} {
    %c0 = arith.constant 0 : index
    %c0_0 = arith.constant 0 : index
    %0 = vector.load %arg2[%c0, %c0_0] : memref<1x16xf32, #tpu.memory_space<vmem>>, vector<1x16xf32>
    %cst = arith.constant 1.000000e+00 : f32
    %1 = vector.broadcast %cst : f32 to vector<1x16xf32>
    %2 = arith.addf %0, %1 : vector<1x16xf32>
    %cst_1 = arith.constant 5.000000e-01 : f32
    %3 = vector.broadcast %cst_1 : f32 to vector<1x16xf32>
    %4 = arith.mulf %2, %3 : vector<1x16xf32>
    %c0_2 = arith.constant 0 : index
    %5 = memref.load %arg0[%c0_2] : memref<50xf32, #tpu.memory_space<smem>>
    %6 = vector.broadcast %5 : f32 to vector<1x16xf32>
    %7 = arith.mulf %6, %4 : vector<1x16xf32>
    %8 = arith.truncf %4 : vector<1x16xf32> to vector<1x16xbf16>
    %c0_3 = arith.constant 0 : index
    %c0_4 = arith.constant 0 : index
    %c0_5 = arith.constant 0 : index
    %9 = vector.load %arg1[%c0_3, %c0_4, %c0_5] : memref<4x16x16xbf16, #tpu.memory_space<vmem>>, vector<1x16x16xbf16>
    %10 = vector.shape_cast %9 : vector<1x16x16xbf16> to vector<16x16xbf16>
    %cst_6 = arith.constant dense<0.000000e+00> : vector<1x16xf32>
    %11 = tpu.matmul %8, %10, %cst_6 {dimension_numbers = #tpu.dot_dimension_numbers<[1], [0], [0], [1], [0, 0, 1, 1], [], []>} : vector<1x16xbf16>, vector<16x16xbf16>, vector<1x16xf32> -> vector<1x16xf32>
    %c1 = arith.constant 1 : index
    %12 = memref.load %arg0[%c1] : memref<50xf32, #tpu.memory_space<smem>>
    %13 = vector.broadcast %12 : f32 to vector<1x16xf32>
    %14 = arith.mulf %13, %11 : vector<1x16xf32>
    %15 = arith.addf %7, %14 : vector<1x16xf32>
    %16 = arith.truncf %4 : vector<1x16xf32> to vector<1x16xbf16>
    %c1_7 = arith.constant 1 : index
    %c0_8 = arith.constant 0 : index
    %c0_9 = arith.constant 0 : index
    %17 = vector.load %arg1[%c1_7, %c0_8, %c0_9] : memref<4x16x16xbf16, #tpu.memory_space<vmem>>, vector<1x16x16xbf16>
    %18 = vector.shape_cast %17 : vector<1x16x16xbf16> to vector<16x16xbf16>
    %cst_10 = arith.constant dense<0.000000e+00> : vector<1x16xf32>
    %19 = tpu.matmul %16, %18, %cst_10 {dimension_numbers = #tpu.dot_dimension_numbers<[1], [0], [0], [1], [0, 0, 1, 1], [], []>} : vector<1x16xbf16>, vector<16x16xbf16>, vector<1x16xf32> -> vector<1x16xf32>
    %c2 = arith.constant 2 : index
    %20 = memref.load %arg0[%c2] : memref<50xf32, #tpu.memory_space<smem>>
    %21 = vector.broadcast %20 : f32 to vector<1x16xf32>
    %22 = arith.mulf %21, %19 : vector<1x16xf32>
    %23 = arith.addf %15, %22 : vector<1x16xf32>
    %24 = arith.truncf %4 : vector<1x16xf32> to vector<1x16xbf16>
    %c2_11 = arith.constant 2 : index
    %c0_12 = arith.constant 0 : index
    %c0_13 = arith.constant 0 : index
    %25 = vector.load %arg1[%c2_11, %c0_12, %c0_13] : memref<4x16x16xbf16, #tpu.memory_space<vmem>>, vector<1x16x16xbf16>
    %26 = vector.shape_cast %25 : vector<1x16x16xbf16> to vector<16x16xbf16>
    %cst_14 = arith.constant dense<0.000000e+00> : vector<1x16xf32>
    %27 = tpu.matmul %24, %26, %cst_14 {dimension_numbers = #tpu.dot_dimension_numbers<[1], [0], [0], [1], [0, 0, 1, 1], [], []>} : vector<1x16xbf16>, vector<16x16xbf16>, vector<1x16xf32> -> vector<1x16xf32>
    %c3 = arith.constant 3 : index
    %28 = memref.load %arg0[%c3] : memref<50xf32, #tpu.memory_space<smem>>
    %29 = vector.broadcast %28 : f32 to vector<1x16xf32>
    %30 = arith.mulf %29, %27 : vector<1x16xf32>
    %31 = arith.addf %23, %30 : vector<1x16xf32>
    %32 = arith.truncf %4 : vector<1x16xf32> to vector<1x16xbf16>
    %c3_15 = arith.constant 3 : index
    %c0_16 = arith.constant 0 : index
    %c0_17 = arith.constant 0 : index
    %33 = vector.load %arg1[%c3_15, %c0_16, %c0_17] : memref<4x16x16xbf16, #tpu.memory_space<vmem>>, vector<1x16x16xbf16>
    %34 = vector.shape_cast %33 : vector<1x16x16xbf16> to vector<16x16xbf16>
    %cst_18 = arith.constant dense<0.000000e+00> : vector<1x16xf32>
    %35 = tpu.matmul %32, %34, %cst_18 {dimension_numbers = #tpu.dot_dimension_numbers<[1], [0], [0], [1], [0, 0, 1, 1], [], []>} : vector<1x16xbf16>, vector<16x16xbf16>, vector<1x16xf32> -> vector<1x16xf32>
    %c4 = arith.constant 4 : index
    %36 = memref.load %arg0[%c4] : memref<50xf32, #tpu.memory_space<smem>>
    %37 = vector.broadcast %36 : f32 to vector<1x16xf32>
    %38 = arith.mulf %37, %35 : vector<1x16xf32>
    %39 = arith.addf %31, %38 : vector<1x16xf32>
    %cst_19 = arith.constant 0.000000e+00 : f32
    %40 = vector.broadcast %cst_19 : f32 to vector<1x16xf32>
    %41 = arith.cmpf oge, %39, %40 : vector<1x16xf32>
    %cst_20 = arith.constant 0.00999999977 : f32
    %42 = vector.broadcast %cst_20 : f32 to vector<1x16xf32>
    %43 = arith.mulf %42, %39 : vector<1x16xf32>
    %44 = arith.select %41, %39, %43 : vector<1x16xi1>, vector<1x16xf32>
    %cst_21 = arith.constant dense<0.000000e+00> : vector<1xf32>
    %45 = vector.multi_reduction <add>, %44, %cst_21 [1] : vector<1x16xf32> to vector<1xf32>
    %46 = vector.shape_cast %45 : vector<1xf32> to vector<1x1xf32>
    %cst_22 = arith.constant 6.250000e-02 : f32
    %47 = vector.broadcast %cst_22 : f32 to vector<1x1xf32>
    %48 = arith.mulf %46, %47 : vector<1x1xf32>
    %49 = vector.broadcast %48 : vector<1x1xf32> to vector<1x16xf32>
    %50 = arith.divf %44, %49 : vector<1x16xf32>
    %cst_23 = arith.constant dense<0.000000e+00> : vector<1xf32>
    %51 = vector.multi_reduction <add>, %50, %cst_23 [1] : vector<1x16xf32> to vector<1xf32>
    %52 = vector.shape_cast %51 : vector<1xf32> to vector<1x1xf32>
    %cst_24 = arith.constant 6.250000e-02 : f32
    %53 = vector.broadcast %cst_24 : f32 to vector<1x1xf32>
    %54 = arith.mulf %52, %53 : vector<1x1xf32>
    %55 = vector.broadcast %54 : vector<1x1xf32> to vector<1x16xf32>
    %56 = arith.subf %50, %55 : vector<1x16xf32>
    %c5 = arith.constant 5 : index
    %57 = memref.load %arg0[%c5] : memref<50xf32, #tpu.memory_space<smem>>
    %58 = vector.broadcast %57 : f32 to vector<1x16xf32>
    %59 = arith.mulf %58, %56 : vector<1x16xf32>
    %60 = arith.truncf %56 : vector<1x16xf32> to vector<1x16xbf16>
    %c0_25 = arith.constant 0 : index
    %c0_26 = arith.constant 0 : index
    %c0_27 = arith.constant 0 : index
    %61 = vector.load %arg1[%c0_25, %c0_26, %c0_27] : memref<4x16x16xbf16, #tpu.memory_space<vmem>>, vector<1x16x16xbf16>
    %62 = vector.shape_cast %61 : vector<1x16x16xbf16> to vector<16x16xbf16>
    %cst_28 = arith.constant dense<0.000000e+00> : vector<1x16xf32>
    %63 = tpu.matmul %60, %62, %cst_28 {dimension_numbers = #tpu.dot_dimension_numbers<[1], [0], [0], [1], [0, 0, 1, 1], [], []>} : vector<1x16xbf16>, vector<16x16xbf16>, vector<1x16xf32> -> vector<1x16xf32>
    %c6 = arith.constant 6 : index
    %64 = memref.load %arg0[%c6] : memref<50xf32, #tpu.memory_space<smem>>
    %65 = vector.broadcast %64 : f32 to vector<1x16xf32>
    %66 = arith.mulf %65, %63 : vector<1x16xf32>
    %67 = arith.addf %59, %66 : vector<1x16xf32>
    %68 = arith.truncf %56 : vector<1x16xf32> to vector<1x16xbf16>
    %c1_29 = arith.constant 1 : index
    %c0_30 = arith.constant 0 : index
    %c0_31 = arith.constant 0 : index
    %69 = vector.load %arg1[%c1_29, %c0_30, %c0_31] : memref<4x16x16xbf16, #tpu.memory_space<vmem>>, vector<1x16x16xbf16>
    %70 = vector.shape_cast %69 : vector<1x16x16xbf16> to vector<16x16xbf16>
    %cst_32 = arith.constant dense<0.000000e+00> : vector<1x16xf32>
    %71 = tpu.matmul %68, %70, %cst_32 {dimension_numbers = #tpu.dot_dimension_numbers<[1], [0], [0], [1], [0, 0, 1, 1], [], []>} : vector<1x16xbf16>, vector<16x16xbf16>, vector<1x16xf32> -> vector<1x16xf32>
    %c7 = arith.constant 7 : index
    %72 = memref.load %arg0[%c7] : memref<50xf32, #tpu.memory_space<smem>>
    %73 = vector.broadcast %72 : f32 to vector<1x16xf32>
    %74 = arith.mulf %73, %71 : vector<1x16xf32>
    %75 = arith.addf %67, %74 : vector<1x16xf32>
    %76 = arith.truncf %56 : vector<1x16xf32> to vector<1x16xbf16>
    %c2_33 = arith.constant 2 : index
    %c0_34 = arith.constant 0 : index
    %c0_35 = arith.constant 0 : index
    %77 = vector.load %arg1[%c2_33, %c0_34, %c0_35] : memref<4x16x16xbf16, #tpu.memory_space<vmem>>, vector<1x16x16xbf16>
    %78 = vector.shape_cast %77 : vector<1x16x16xbf16> to vector<16x16xbf16>
    %cst_36 = arith.constant dense<0.000000e+00> : vector<1x16xf32>
    %79 = tpu.matmul %76, %78, %cst_36 {dimension_numbers = #tpu.dot_dimension_numbers<[1], [0], [0], [1], [0, 0, 1, 1], [], []>} : vector<1x16xbf16>, vector<16x16xbf16>, vector<1x16xf32> -> vector<1x16xf32>
    %c8 = arith.constant 8 : index
    %80 = memref.load %arg0[%c8] : memref<50xf32, #tpu.memory_space<smem>>
    %81 = vector.broadcast %80 : f32 to vector<1x16xf32>
    %82 = arith.mulf %81, %79 : vector<1x16xf32>
    %83 = arith.addf %75, %82 : vector<1x16xf32>
    %84 = arith.truncf %56 : vector<1x16xf32> to vector<1x16xbf16>
    %c3_37 = arith.constant 3 : index
    %c0_38 = arith.constant 0 : index
    %c0_39 = arith.constant 0 : index
    %85 = vector.load %arg1[%c3_37, %c0_38, %c0_39] : memref<4x16x16xbf16, #tpu.memory_space<vmem>>, vector<1x16x16xbf16>
    %86 = vector.shape_cast %85 : vector<1x16x16xbf16> to vector<16x16xbf16>
    %cst_40 = arith.constant dense<0.000000e+00> : vector<1x16xf32>
    %87 = tpu.matmul %84, %86, %cst_40 {dimension_numbers = #tpu.dot_dimension_numbers<[1], [0], [0], [1], [0, 0, 1, 1], [], []>} : vector<1x16xbf16>, vector<16x16xbf16>, vector<1x16xf32> -> vector<1x16xf32>
    %c9 = arith.constant 9 : index
    %88 = memref.load %arg0[%c9] : memref<50xf32, #tpu.memory_space<smem>>
    %89 = vector.broadcast %88 : f32 to vector<1x16xf32>
    %90 = arith.mulf %89, %87 : vector<1x16xf32>
    %91 = arith.addf %83, %90 : vector<1x16xf32>
    %cst_41 = arith.constant 0.000000e+00 : f32
    %92 = vector.broadcast %cst_41 : f32 to vector<1x16xf32>
    %93 = arith.cmpf oge, %91, %92 : vector<1x16xf32>
    %cst_42 = arith.constant 0.00999999977 : f32
    %94 = vector.broadcast %cst_42 : f32 to vector<1x16xf32>
    %95 = arith.mulf %94, %91 : vector<1x16xf32>
    %96 = arith.select %93, %91, %95 : vector<1x16xi1>, vector<1x16xf32>
    %cst_43 = arith.constant dense<0.000000e+00> : vector<1xf32>
    %97 = vector.multi_reduction <add>, %96, %cst_43 [1] : vector<1x16xf32> to vector<1xf32>
    %98 = vector.shape_cast %97 : vector<1xf32> to vector<1x1xf32>
    %cst_44 = arith.constant 6.250000e-02 : f32
    %99 = vector.broadcast %cst_44 : f32 to vector<1x1xf32>
    %100 = arith.mulf %98, %99 : vector<1x1xf32>
    %101 = vector.broadcast %100 : vector<1x1xf32> to vector<1x16xf32>
    %102 = arith.divf %96, %101 : vector<1x16xf32>
    %cst_45 = arith.constant dense<0.000000e+00> : vector<1xf32>
    %103 = vector.multi_reduction <add>, %102, %cst_45 [1] : vector<1x16xf32> to vector<1xf32>
    %104 = vector.shape_cast %103 : vector<1xf32> to vector<1x1xf32>
    %cst_46 = arith.constant 6.250000e-02 : f32
    %105 = vector.broadcast %cst_46 : f32 to vector<1x1xf32>
    %106 = arith.mulf %104, %105 : vector<1x1xf32>
    %107 = vector.broadcast %106 : vector<1x1xf32> to vector<1x16xf32>
    %108 = arith.subf %102, %107 : vector<1x16xf32>
    %c10 = arith.constant 10 : index
    %109 = memref.load %arg0[%c10] : memref<50xf32, #tpu.memory_space<smem>>
    %110 = vector.broadcast %109 : f32 to vector<1x16xf32>
    %111 = arith.mulf %110, %108 : vector<1x16xf32>
    %112 = arith.truncf %108 : vector<1x16xf32> to vector<1x16xbf16>
    %c0_47 = arith.constant 0 : index
    %c0_48 = arith.constant 0 : index
    %c0_49 = arith.constant 0 : index
    %113 = vector.load %arg1[%c0_47, %c0_48, %c0_49] : memref<4x16x16xbf16, #tpu.memory_space<vmem>>, vector<1x16x16xbf16>
    %114 = vector.shape_cast %113 : vector<1x16x16xbf16> to vector<16x16xbf16>
    %cst_50 = arith.constant dense<0.000000e+00> : vector<1x16xf32>
    %115 = tpu.matmul %112, %114, %cst_50 {dimension_numbers = #tpu.dot_dimension_numbers<[1], [0], [0], [1], [0, 0, 1, 1], [], []>} : vector<1x16xbf16>, vector<16x16xbf16>, vector<1x16xf32> -> vector<1x16xf32>
    %c11 = arith.constant 11 : index
    %116 = memref.load %arg0[%c11] : memref<50xf32, #tpu.memory_space<smem>>
    %117 = vector.broadcast %116 : f32 to vector<1x16xf32>
    %118 = arith.mulf %117, %115 : vector<1x16xf32>
    %119 = arith.addf %111, %118 : vector<1x16xf32>
    %120 = arith.truncf %108 : vector<1x16xf32> to vector<1x16xbf16>
    %c1_51 = arith.constant 1 : index
    %c0_52 = arith.constant 0 : index
    %c0_53 = arith.constant 0 : index
    %121 = vector.load %arg1[%c1_51, %c0_52, %c0_53] : memref<4x16x16xbf16, #tpu.memory_space<vmem>>, vector<1x16x16xbf16>
    %122 = vector.shape_cast %121 : vector<1x16x16xbf16> to vector<16x16xbf16>
    %cst_54 = arith.constant dense<0.000000e+00> : vector<1x16xf32>
    %123 = tpu.matmul %120, %122, %cst_54 {dimension_numbers = #tpu.dot_dimension_numbers<[1], [0], [0], [1], [0, 0, 1, 1], [], []>} : vector<1x16xbf16>, vector<16x16xbf16>, vector<1x16xf32> -> vector<1x16xf32>
    %c12 = arith.constant 12 : index
    %124 = memref.load %arg0[%c12] : memref<50xf32, #tpu.memory_space<smem>>
    %125 = vector.broadcast %124 : f32 to vector<1x16xf32>
    %126 = arith.mulf %125, %123 : vector<1x16xf32>
    %127 = arith.addf %119, %126 : vector<1x16xf32>
    %128 = arith.truncf %108 : vector<1x16xf32> to vector<1x16xbf16>
    %c2_55 = arith.constant 2 : index
    %c0_56 = arith.constant 0 : index
    %c0_57 = arith.constant 0 : index
    %129 = vector.load %arg1[%c2_55, %c0_56, %c0_57] : memref<4x16x16xbf16, #tpu.memory_space<vmem>>, vector<1x16x16xbf16>
    %130 = vector.shape_cast %129 : vector<1x16x16xbf16> to vector<16x16xbf16>
    %cst_58 = arith.constant dense<0.000000e+00> : vector<1x16xf32>
    %131 = tpu.matmul %128, %130, %cst_58 {dimension_numbers = #tpu.dot_dimension_numbers<[1], [0], [0], [1], [0, 0, 1, 1], [], []>} : vector<1x16xbf16>, vector<16x16xbf16>, vector<1x16xf32> -> vector<1x16xf32>
    %c13 = arith.constant 13 : index
    %132 = memref.load %arg0[%c13] : memref<50xf32, #tpu.memory_space<smem>>
    %133 = vector.broadcast %132 : f32 to vector<1x16xf32>
    %134 = arith.mulf %133, %131 : vector<1x16xf32>
    %135 = arith.addf %127, %134 : vector<1x16xf32>
    %136 = arith.truncf %108 : vector<1x16xf32> to vector<1x16xbf16>
    %c3_59 = arith.constant 3 : index
    %c0_60 = arith.constant 0 : index
    %c0_61 = arith.constant 0 : index
    %137 = vector.load %arg1[%c3_59, %c0_60, %c0_61] : memref<4x16x16xbf16, #tpu.memory_space<vmem>>, vector<1x16x16xbf16>
    %138 = vector.shape_cast %137 : vector<1x16x16xbf16> to vector<16x16xbf16>
    %cst_62 = arith.constant dense<0.000000e+00> : vector<1x16xf32>
    %139 = tpu.matmul %136, %138, %cst_62 {dimension_numbers = #tpu.dot_dimension_numbers<[1], [0], [0], [1], [0, 0, 1, 1], [], []>} : vector<1x16xbf16>, vector<16x16xbf16>, vector<1x16xf32> -> vector<1x16xf32>
    %c14 = arith.constant 14 : index
    %140 = memref.load %arg0[%c14] : memref<50xf32, #tpu.memory_space<smem>>
    %141 = vector.broadcast %140 : f32 to vector<1x16xf32>
    %142 = arith.mulf %141, %139 : vector<1x16xf32>
    %143 = arith.addf %135, %142 : vector<1x16xf32>
    %cst_63 = arith.constant 0.000000e+00 : f32
    %144 = vector.broadcast %cst_63 : f32 to vector<1x16xf32>
    %145 = arith.cmpf oge, %143, %144 : vector<1x16xf32>
    %cst_64 = arith.constant 0.00999999977 : f32
    %146 = vector.broadcast %cst_64 : f32 to vector<1x16xf32>
    %147 = arith.mulf %146, %143 : vector<1x16xf32>
    %148 = arith.select %145, %143, %147 : vector<1x16xi1>, vector<1x16xf32>
    %cst_65 = arith.constant dense<0.000000e+00> : vector<1xf32>
    %149 = vector.multi_reduction <add>, %148, %cst_65 [1] : vector<1x16xf32> to vector<1xf32>
    %150 = vector.shape_cast %149 : vector<1xf32> to vector<1x1xf32>
    %cst_66 = arith.constant 6.250000e-02 : f32
    %151 = vector.broadcast %cst_66 : f32 to vector<1x1xf32>
    %152 = arith.mulf %150, %151 : vector<1x1xf32>
    %153 = vector.broadcast %152 : vector<1x1xf32> to vector<1x16xf32>
    %154 = arith.divf %148, %153 : vector<1x16xf32>
    %cst_67 = arith.constant dense<0.000000e+00> : vector<1xf32>
    %155 = vector.multi_reduction <add>, %154, %cst_67 [1] : vector<1x16xf32> to vector<1xf32>
    %156 = vector.shape_cast %155 : vector<1xf32> to vector<1x1xf32>
    %cst_68 = arith.constant 6.250000e-02 : f32
    %157 = vector.broadcast %cst_68 : f32 to vector<1x1xf32>
    %158 = arith.mulf %156, %157 : vector<1x1xf32>
    %159 = vector.broadcast %158 : vector<1x1xf32> to vector<1x16xf32>
    %160 = arith.subf %154, %159 : vector<1x16xf32>
    %c15 = arith.constant 15 : index
    %161 = memref.load %arg0[%c15] : memref<50xf32, #tpu.memory_space<smem>>
    %162 = vector.broadcast %161 : f32 to vector<1x16xf32>
    %163 = arith.mulf %162, %160 : vector<1x16xf32>
    %164 = arith.truncf %160 : vector<1x16xf32> to vector<1x16xbf16>
    %c0_69 = arith.constant 0 : index
    %c0_70 = arith.constant 0 : index
    %c0_71 = arith.constant 0 : index
    %165 = vector.load %arg1[%c0_69, %c0_70, %c0_71] : memref<4x16x16xbf16, #tpu.memory_space<vmem>>, vector<1x16x16xbf16>
    %166 = vector.shape_cast %165 : vector<1x16x16xbf16> to vector<16x16xbf16>
    %cst_72 = arith.constant dense<0.000000e+00> : vector<1x16xf32>
    %167 = tpu.matmul %164, %166, %cst_72 {dimension_numbers = #tpu.dot_dimension_numbers<[1], [0], [0], [1], [0, 0, 1, 1], [], []>} : vector<1x16xbf16>, vector<16x16xbf16>, vector<1x16xf32> -> vector<1x16xf32>
    %c16 = arith.constant 16 : index
    %168 = memref.load %arg0[%c16] : memref<50xf32, #tpu.memory_space<smem>>
    %169 = vector.broadcast %168 : f32 to vector<1x16xf32>
    %170 = arith.mulf %169, %167 : vector<1x16xf32>
    %171 = arith.addf %163, %170 : vector<1x16xf32>
    %172 = arith.truncf %160 : vector<1x16xf32> to vector<1x16xbf16>
    %c1_73 = arith.constant 1 : index
    %c0_74 = arith.constant 0 : index
    %c0_75 = arith.constant 0 : index
    %173 = vector.load %arg1[%c1_73, %c0_74, %c0_75] : memref<4x16x16xbf16, #tpu.memory_space<vmem>>, vector<1x16x16xbf16>
    %174 = vector.shape_cast %173 : vector<1x16x16xbf16> to vector<16x16xbf16>
    %cst_76 = arith.constant dense<0.000000e+00> : vector<1x16xf32>
    %175 = tpu.matmul %172, %174, %cst_76 {dimension_numbers = #tpu.dot_dimension_numbers<[1], [0], [0], [1], [0, 0, 1, 1], [], []>} : vector<1x16xbf16>, vector<16x16xbf16>, vector<1x16xf32> -> vector<1x16xf32>
    %c17 = arith.constant 17 : index
    %176 = memref.load %arg0[%c17] : memref<50xf32, #tpu.memory_space<smem>>
    %177 = vector.broadcast %176 : f32 to vector<1x16xf32>
    %178 = arith.mulf %177, %175 : vector<1x16xf32>
    %179 = arith.addf %171, %178 : vector<1x16xf32>
    %180 = arith.truncf %160 : vector<1x16xf32> to vector<1x16xbf16>
    %c2_77 = arith.constant 2 : index
    %c0_78 = arith.constant 0 : index
    %c0_79 = arith.constant 0 : index
    %181 = vector.load %arg1[%c2_77, %c0_78, %c0_79] : memref<4x16x16xbf16, #tpu.memory_space<vmem>>, vector<1x16x16xbf16>
    %182 = vector.shape_cast %181 : vector<1x16x16xbf16> to vector<16x16xbf16>
    %cst_80 = arith.constant dense<0.000000e+00> : vector<1x16xf32>
    %183 = tpu.matmul %180, %182, %cst_80 {dimension_numbers = #tpu.dot_dimension_numbers<[1], [0], [0], [1], [0, 0, 1, 1], [], []>} : vector<1x16xbf16>, vector<16x16xbf16>, vector<1x16xf32> -> vector<1x16xf32>
    %c18 = arith.constant 18 : index
    %184 = memref.load %arg0[%c18] : memref<50xf32, #tpu.memory_space<smem>>
    %185 = vector.broadcast %184 : f32 to vector<1x16xf32>
    %186 = arith.mulf %185, %183 : vector<1x16xf32>
    %187 = arith.addf %179, %186 : vector<1x16xf32>
    %188 = arith.truncf %160 : vector<1x16xf32> to vector<1x16xbf16>
    %c3_81 = arith.constant 3 : index
    %c0_82 = arith.constant 0 : index
    %c0_83 = arith.constant 0 : index
    %189 = vector.load %arg1[%c3_81, %c0_82, %c0_83] : memref<4x16x16xbf16, #tpu.memory_space<vmem>>, vector<1x16x16xbf16>
    %190 = vector.shape_cast %189 : vector<1x16x16xbf16> to vector<16x16xbf16>
    %cst_84 = arith.constant dense<0.000000e+00> : vector<1x16xf32>
    %191 = tpu.matmul %188, %190, %cst_84 {dimension_numbers = #tpu.dot_dimension_numbers<[1], [0], [0], [1], [0, 0, 1, 1], [], []>} : vector<1x16xbf16>, vector<16x16xbf16>, vector<1x16xf32> -> vector<1x16xf32>
    %c19 = arith.constant 19 : index
    %192 = memref.load %arg0[%c19] : memref<50xf32, #tpu.memory_space<smem>>
    %193 = vector.broadcast %192 : f32 to vector<1x16xf32>
    %194 = arith.mulf %193, %191 : vector<1x16xf32>
    %195 = arith.addf %187, %194 : vector<1x16xf32>
    %cst_85 = arith.constant 0.000000e+00 : f32
    %196 = vector.broadcast %cst_85 : f32 to vector<1x16xf32>
    %197 = arith.cmpf oge, %195, %196 : vector<1x16xf32>
    %cst_86 = arith.constant 0.00999999977 : f32
    %198 = vector.broadcast %cst_86 : f32 to vector<1x16xf32>
    %199 = arith.mulf %198, %195 : vector<1x16xf32>
    %200 = arith.select %197, %195, %199 : vector<1x16xi1>, vector<1x16xf32>
    %cst_87 = arith.constant dense<0.000000e+00> : vector<1xf32>
    %201 = vector.multi_reduction <add>, %200, %cst_87 [1] : vector<1x16xf32> to vector<1xf32>
    %202 = vector.shape_cast %201 : vector<1xf32> to vector<1x1xf32>
    %cst_88 = arith.constant 6.250000e-02 : f32
    %203 = vector.broadcast %cst_88 : f32 to vector<1x1xf32>
    %204 = arith.mulf %202, %203 : vector<1x1xf32>
    %205 = vector.broadcast %204 : vector<1x1xf32> to vector<1x16xf32>
    %206 = arith.divf %200, %205 : vector<1x16xf32>
    %cst_89 = arith.constant dense<0.000000e+00> : vector<1xf32>
    %207 = vector.multi_reduction <add>, %206, %cst_89 [1] : vector<1x16xf32> to vector<1xf32>
    %208 = vector.shape_cast %207 : vector<1xf32> to vector<1x1xf32>
    %cst_90 = arith.constant 6.250000e-02 : f32
    %209 = vector.broadcast %cst_90 : f32 to vector<1x1xf32>
    %210 = arith.mulf %208, %209 : vector<1x1xf32>
    %211 = vector.broadcast %210 : vector<1x1xf32> to vector<1x16xf32>
    %212 = arith.subf %206, %211 : vector<1x16xf32>
    %c20 = arith.constant 20 : index
    %213 = memref.load %arg0[%c20] : memref<50xf32, #tpu.memory_space<smem>>
    %214 = vector.broadcast %213 : f32 to vector<1x16xf32>
    %215 = arith.mulf %214, %212 : vector<1x16xf32>
    %216 = arith.truncf %212 : vector<1x16xf32> to vector<1x16xbf16>
    %c0_91 = arith.constant 0 : index
    %c0_92 = arith.constant 0 : index
    %c0_93 = arith.constant 0 : index
    %217 = vector.load %arg1[%c0_91, %c0_92, %c0_93] : memref<4x16x16xbf16, #tpu.memory_space<vmem>>, vector<1x16x16xbf16>
    %218 = vector.shape_cast %217 : vector<1x16x16xbf16> to vector<16x16xbf16>
    %cst_94 = arith.constant dense<0.000000e+00> : vector<1x16xf32>
    %219 = tpu.matmul %216, %218, %cst_94 {dimension_numbers = #tpu.dot_dimension_numbers<[1], [0], [0], [1], [0, 0, 1, 1], [], []>} : vector<1x16xbf16>, vector<16x16xbf16>, vector<1x16xf32> -> vector<1x16xf32>
    %c21 = arith.constant 21 : index
    %220 = memref.load %arg0[%c21] : memref<50xf32, #tpu.memory_space<smem>>
    %221 = vector.broadcast %220 : f32 to vector<1x16xf32>
    %222 = arith.mulf %221, %219 : vector<1x16xf32>
    %223 = arith.addf %215, %222 : vector<1x16xf32>
    %224 = arith.truncf %212 : vector<1x16xf32> to vector<1x16xbf16>
    %c1_95 = arith.constant 1 : index
    %c0_96 = arith.constant 0 : index
    %c0_97 = arith.constant 0 : index
    %225 = vector.load %arg1[%c1_95, %c0_96, %c0_97] : memref<4x16x16xbf16, #tpu.memory_space<vmem>>, vector<1x16x16xbf16>
    %226 = vector.shape_cast %225 : vector<1x16x16xbf16> to vector<16x16xbf16>
    %cst_98 = arith.constant dense<0.000000e+00> : vector<1x16xf32>
    %227 = tpu.matmul %224, %226, %cst_98 {dimension_numbers = #tpu.dot_dimension_numbers<[1], [0], [0], [1], [0, 0, 1, 1], [], []>} : vector<1x16xbf16>, vector<16x16xbf16>, vector<1x16xf32> -> vector<1x16xf32>
    %c22 = arith.constant 22 : index
    %228 = memref.load %arg0[%c22] : memref<50xf32, #tpu.memory_space<smem>>
    %229 = vector.broadcast %228 : f32 to vector<1x16xf32>
    %230 = arith.mulf %229, %227 : vector<1x16xf32>
    %231 = arith.addf %223, %230 : vector<1x16xf32>
    %232 = arith.truncf %212 : vector<1x16xf32> to vector<1x16xbf16>
    %c2_99 = arith.constant 2 : index
    %c0_100 = arith.constant 0 : index
    %c0_101 = arith.constant 0 : index
    %233 = vector.load %arg1[%c2_99, %c0_100, %c0_101] : memref<4x16x16xbf16, #tpu.memory_space<vmem>>, vector<1x16x16xbf16>
    %234 = vector.shape_cast %233 : vector<1x16x16xbf16> to vector<16x16xbf16>
    %cst_102 = arith.constant dense<0.000000e+00> : vector<1x16xf32>
    %235 = tpu.matmul %232, %234, %cst_102 {dimension_numbers = #tpu.dot_dimension_numbers<[1], [0], [0], [1], [0, 0, 1, 1], [], []>} : vector<1x16xbf16>, vector<16x16xbf16>, vector<1x16xf32> -> vector<1x16xf32>
    %c23 = arith.constant 23 : index
    %236 = memref.load %arg0[%c23] : memref<50xf32, #tpu.memory_space<smem>>
    %237 = vector.broadcast %236 : f32 to vector<1x16xf32>
    %238 = arith.mulf %237, %235 : vector<1x16xf32>
    %239 = arith.addf %231, %238 : vector<1x16xf32>
    %240 = arith.truncf %212 : vector<1x16xf32> to vector<1x16xbf16>
    %c3_103 = arith.constant 3 : index
    %c0_104 = arith.constant 0 : index
    %c0_105 = arith.constant 0 : index
    %241 = vector.load %arg1[%c3_103, %c0_104, %c0_105] : memref<4x16x16xbf16, #tpu.memory_space<vmem>>, vector<1x16x16xbf16>
    %242 = vector.shape_cast %241 : vector<1x16x16xbf16> to vector<16x16xbf16>
    %cst_106 = arith.constant dense<0.000000e+00> : vector<1x16xf32>
    %243 = tpu.matmul %240, %242, %cst_106 {dimension_numbers = #tpu.dot_dimension_numbers<[1], [0], [0], [1], [0, 0, 1, 1], [], []>} : vector<1x16xbf16>, vector<16x16xbf16>, vector<1x16xf32> -> vector<1x16xf32>
    %c24 = arith.constant 24 : index
    %244 = memref.load %arg0[%c24] : memref<50xf32, #tpu.memory_space<smem>>
    %245 = vector.broadcast %244 : f32 to vector<1x16xf32>
    %246 = arith.mulf %245, %243 : vector<1x16xf32>
    %247 = arith.addf %239, %246 : vector<1x16xf32>
    %cst_107 = arith.constant 0.000000e+00 : f32
    %248 = vector.broadcast %cst_107 : f32 to vector<1x16xf32>
    %249 = arith.cmpf oge, %247, %248 : vector<1x16xf32>
    %cst_108 = arith.constant 0.00999999977 : f32
    %250 = vector.broadcast %cst_108 : f32 to vector<1x16xf32>
    %251 = arith.mulf %250, %247 : vector<1x16xf32>
    %252 = arith.select %249, %247, %251 : vector<1x16xi1>, vector<1x16xf32>
    %cst_109 = arith.constant dense<0.000000e+00> : vector<1xf32>
    %253 = vector.multi_reduction <add>, %252, %cst_109 [1] : vector<1x16xf32> to vector<1xf32>
    %254 = vector.shape_cast %253 : vector<1xf32> to vector<1x1xf32>
    %cst_110 = arith.constant 6.250000e-02 : f32
    %255 = vector.broadcast %cst_110 : f32 to vector<1x1xf32>
    %256 = arith.mulf %254, %255 : vector<1x1xf32>
    %257 = vector.broadcast %256 : vector<1x1xf32> to vector<1x16xf32>
    %258 = arith.divf %252, %257 : vector<1x16xf32>
    %cst_111 = arith.constant dense<0.000000e+00> : vector<1xf32>
    %259 = vector.multi_reduction <add>, %258, %cst_111 [1] : vector<1x16xf32> to vector<1xf32>
    %260 = vector.shape_cast %259 : vector<1xf32> to vector<1x1xf32>
    %cst_112 = arith.constant 6.250000e-02 : f32
    %261 = vector.broadcast %cst_112 : f32 to vector<1x1xf32>
    %262 = arith.mulf %260, %261 : vector<1x1xf32>
    %263 = vector.broadcast %262 : vector<1x1xf32> to vector<1x16xf32>
    %264 = arith.subf %258, %263 : vector<1x16xf32>
    %265 = arith.negf %264 : vector<1x16xf32>
    %266 = math.exp %265 : vector<1x16xf32>
    %cst_113 = arith.constant 1.000000e+00 : f32
    %267 = vector.broadcast %cst_113 : f32 to vector<1x16xf32>
    %268 = arith.addf %267, %266 : vector<1x16xf32>
    %269 = arith.divf %267, %268 : vector<1x16xf32>
    %c0_114 = arith.constant 0 : index
    %c0_115 = arith.constant 0 : index
    %270 = vector.load %arg3[%c0_114, %c0_115] : memref<2x16xf32, #tpu.memory_space<vmem>>, vector<1x16xf32>
    tpu.vector_store %arg3[%c0_114, %c0_115], %269 {strides = array<i32>} : memref<2x16xf32, #tpu.memory_space<vmem>>, vector<1x16xf32>,
    %c25 = arith.constant 25 : index
    %271 = memref.load %arg0[%c25] : memref<50xf32, #tpu.memory_space<smem>>
    %272 = vector.broadcast %271 : f32 to vector<1x16xf32>
    %273 = arith.mulf %272, %264 : vector<1x16xf32>
    %274 = arith.truncf %264 : vector<1x16xf32> to vector<1x16xbf16>
    %c0_116 = arith.constant 0 : index
    %c0_117 = arith.constant 0 : index
    %c0_118 = arith.constant 0 : index
    %275 = vector.load %arg1[%c0_116, %c0_117, %c0_118] : memref<4x16x16xbf16, #tpu.memory_space<vmem>>, vector<1x16x16xbf16>
    %276 = vector.shape_cast %275 : vector<1x16x16xbf16> to vector<16x16xbf16>
    %cst_119 = arith.constant dense<0.000000e+00> : vector<1x16xf32>
    %277 = tpu.matmul %274, %276, %cst_119 {dimension_numbers = #tpu.dot_dimension_numbers<[1], [0], [0], [1], [0, 0, 1, 1], [], []>} : vector<1x16xbf16>, vector<16x16xbf16>, vector<1x16xf32> -> vector<1x16xf32>
    %c26 = arith.constant 26 : index
    %278 = memref.load %arg0[%c26] : memref<50xf32, #tpu.memory_space<smem>>
    %279 = vector.broadcast %278 : f32 to vector<1x16xf32>
    %280 = arith.mulf %279, %277 : vector<1x16xf32>
    %281 = arith.addf %273, %280 : vector<1x16xf32>
    %282 = arith.truncf %264 : vector<1x16xf32> to vector<1x16xbf16>
    %c1_120 = arith.constant 1 : index
    %c0_121 = arith.constant 0 : index
    %c0_122 = arith.constant 0 : index
    %283 = vector.load %arg1[%c1_120, %c0_121, %c0_122] : memref<4x16x16xbf16, #tpu.memory_space<vmem>>, vector<1x16x16xbf16>
    %284 = vector.shape_cast %283 : vector<1x16x16xbf16> to vector<16x16xbf16>
    %cst_123 = arith.constant dense<0.000000e+00> : vector<1x16xf32>
    %285 = tpu.matmul %282, %284, %cst_123 {dimension_numbers = #tpu.dot_dimension_numbers<[1], [0], [0], [1], [0, 0, 1, 1], [], []>} : vector<1x16xbf16>, vector<16x16xbf16>, vector<1x16xf32> -> vector<1x16xf32>
    %c27 = arith.constant 27 : index
    %286 = memref.load %arg0[%c27] : memref<50xf32, #tpu.memory_space<smem>>
    %287 = vector.broadcast %286 : f32 to vector<1x16xf32>
    %288 = arith.mulf %287, %285 : vector<1x16xf32>
    %289 = arith.addf %281, %288 : vector<1x16xf32>
    %290 = arith.truncf %264 : vector<1x16xf32> to vector<1x16xbf16>
    %c2_124 = arith.constant 2 : index
    %c0_125 = arith.constant 0 : index
    %c0_126 = arith.constant 0 : index
    %291 = vector.load %arg1[%c2_124, %c0_125, %c0_126] : memref<4x16x16xbf16, #tpu.memory_space<vmem>>, vector<1x16x16xbf16>
    %292 = vector.shape_cast %291 : vector<1x16x16xbf16> to vector<16x16xbf16>
    %cst_127 = arith.constant dense<0.000000e+00> : vector<1x16xf32>
    %293 = tpu.matmul %290, %292, %cst_127 {dimension_numbers = #tpu.dot_dimension_numbers<[1], [0], [0], [1], [0, 0, 1, 1], [], []>} : vector<1x16xbf16>, vector<16x16xbf16>, vector<1x16xf32> -> vector<1x16xf32>
    %c28 = arith.constant 28 : index
    %294 = memref.load %arg0[%c28] : memref<50xf32, #tpu.memory_space<smem>>
    %295 = vector.broadcast %294 : f32 to vector<1x16xf32>
    %296 = arith.mulf %295, %293 : vector<1x16xf32>
    %297 = arith.addf %289, %296 : vector<1x16xf32>
    %298 = arith.truncf %264 : vector<1x16xf32> to vector<1x16xbf16>
    %c3_128 = arith.constant 3 : index
    %c0_129 = arith.constant 0 : index
    %c0_130 = arith.constant 0 : index
    %299 = vector.load %arg1[%c3_128, %c0_129, %c0_130] : memref<4x16x16xbf16, #tpu.memory_space<vmem>>, vector<1x16x16xbf16>
    %300 = vector.shape_cast %299 : vector<1x16x16xbf16> to vector<16x16xbf16>
    %cst_131 = arith.constant dense<0.000000e+00> : vector<1x16xf32>
    %301 = tpu.matmul %298, %300, %cst_131 {dimension_numbers = #tpu.dot_dimension_numbers<[1], [0], [0], [1], [0, 0, 1, 1], [], []>} : vector<1x16xbf16>, vector<16x16xbf16>, vector<1x16xf32> -> vector<1x16xf32>
    %c29 = arith.constant 29 : index
    %302 = memref.load %arg0[%c29] : memref<50xf32, #tpu.memory_space<smem>>
    %303 = vector.broadcast %302 : f32 to vector<1x16xf32>
    %304 = arith.mulf %303, %301 : vector<1x16xf32>
    %305 = arith.addf %297, %304 : vector<1x16xf32>
    %cst_132 = arith.constant 0.000000e+00 : f32
    %306 = vector.broadcast %cst_132 : f32 to vector<1x16xf32>
    %307 = arith.cmpf oge, %305, %306 : vector<1x16xf32>
    %cst_133 = arith.constant 0.00999999977 : f32
    %308 = vector.broadcast %cst_133 : f32 to vector<1x16xf32>
    %309 = arith.mulf %308, %305 : vector<1x16xf32>
    %310 = arith.select %307, %305, %309 : vector<1x16xi1>, vector<1x16xf32>
    %cst_134 = arith.constant dense<0.000000e+00> : vector<1xf32>
    %311 = vector.multi_reduction <add>, %310, %cst_134 [1] : vector<1x16xf32> to vector<1xf32>
    %312 = vector.shape_cast %311 : vector<1xf32> to vector<1x1xf32>
    %cst_135 = arith.constant 6.250000e-02 : f32
    %313 = vector.broadcast %cst_135 : f32 to vector<1x1xf32>
    %314 = arith.mulf %312, %313 : vector<1x1xf32>
    %315 = vector.broadcast %314 : vector<1x1xf32> to vector<1x16xf32>
    %316 = arith.divf %310, %315 : vector<1x16xf32>
    %cst_136 = arith.constant dense<0.000000e+00> : vector<1xf32>
    %317 = vector.multi_reduction <add>, %316, %cst_136 [1] : vector<1x16xf32> to vector<1xf32>
    %318 = vector.shape_cast %317 : vector<1xf32> to vector<1x1xf32>
    %cst_137 = arith.constant 6.250000e-02 : f32
    %319 = vector.broadcast %cst_137 : f32 to vector<1x1xf32>
    %320 = arith.mulf %318, %319 : vector<1x1xf32>
    %321 = vector.broadcast %320 : vector<1x1xf32> to vector<1x16xf32>
    %322 = arith.subf %316, %321 : vector<1x16xf32>
    %c30 = arith.constant 30 : index
    %323 = memref.load %arg0[%c30] : memref<50xf32, #tpu.memory_space<smem>>
    %324 = vector.broadcast %323 : f32 to vector<1x16xf32>
    %325 = arith.mulf %324, %322 : vector<1x16xf32>
    %326 = arith.truncf %322 : vector<1x16xf32> to vector<1x16xbf16>
    %c0_138 = arith.constant 0 : index
    %c0_139 = arith.constant 0 : index
    %c0_140 = arith.constant 0 : index
    %327 = vector.load %arg1[%c0_138, %c0_139, %c0_140] : memref<4x16x16xbf16, #tpu.memory_space<vmem>>, vector<1x16x16xbf16>
    %328 = vector.shape_cast %327 : vector<1x16x16xbf16> to vector<16x16xbf16>
    %cst_141 = arith.constant dense<0.000000e+00> : vector<1x16xf32>
    %329 = tpu.matmul %326, %328, %cst_141 {dimension_numbers = #tpu.dot_dimension_numbers<[1], [0], [0], [1], [0, 0, 1, 1], [], []>} : vector<1x16xbf16>, vector<16x16xbf16>, vector<1x16xf32> -> vector<1x16xf32>
    %c31 = arith.constant 31 : index
    %330 = memref.load %arg0[%c31] : memref<50xf32, #tpu.memory_space<smem>>
    %331 = vector.broadcast %330 : f32 to vector<1x16xf32>
    %332 = arith.mulf %331, %329 : vector<1x16xf32>
    %333 = arith.addf %325, %332 : vector<1x16xf32>
    %334 = arith.truncf %322 : vector<1x16xf32> to vector<1x16xbf16>
    %c1_142 = arith.constant 1 : index
    %c0_143 = arith.constant 0 : index
    %c0_144 = arith.constant 0 : index
    %335 = vector.load %arg1[%c1_142, %c0_143, %c0_144] : memref<4x16x16xbf16, #tpu.memory_space<vmem>>, vector<1x16x16xbf16>
    %336 = vector.shape_cast %335 : vector<1x16x16xbf16> to vector<16x16xbf16>
    %cst_145 = arith.constant dense<0.000000e+00> : vector<1x16xf32>
    %337 = tpu.matmul %334, %336, %cst_145 {dimension_numbers = #tpu.dot_dimension_numbers<[1], [0], [0], [1], [0, 0, 1, 1], [], []>} : vector<1x16xbf16>, vector<16x16xbf16>, vector<1x16xf32> -> vector<1x16xf32>
    %c32 = arith.constant 32 : index
    %338 = memref.load %arg0[%c32] : memref<50xf32, #tpu.memory_space<smem>>
    %339 = vector.broadcast %338 : f32 to vector<1x16xf32>
    %340 = arith.mulf %339, %337 : vector<1x16xf32>
    %341 = arith.addf %333, %340 : vector<1x16xf32>
    %342 = arith.truncf %322 : vector<1x16xf32> to vector<1x16xbf16>
    %c2_146 = arith.constant 2 : index
    %c0_147 = arith.constant 0 : index
    %c0_148 = arith.constant 0 : index
    %343 = vector.load %arg1[%c2_146, %c0_147, %c0_148] : memref<4x16x16xbf16, #tpu.memory_space<vmem>>, vector<1x16x16xbf16>
    %344 = vector.shape_cast %343 : vector<1x16x16xbf16> to vector<16x16xbf16>
    %cst_149 = arith.constant dense<0.000000e+00> : vector<1x16xf32>
    %345 = tpu.matmul %342, %344, %cst_149 {dimension_numbers = #tpu.dot_dimension_numbers<[1], [0], [0], [1], [0, 0, 1, 1], [], []>} : vector<1x16xbf16>, vector<16x16xbf16>, vector<1x16xf32> -> vector<1x16xf32>
    %c33 = arith.constant 33 : index
    %346 = memref.load %arg0[%c33] : memref<50xf32, #tpu.memory_space<smem>>
    %347 = vector.broadcast %346 : f32 to vector<1x16xf32>
    %348 = arith.mulf %347, %345 : vector<1x16xf32>
    %349 = arith.addf %341, %348 : vector<1x16xf32>
    %350 = arith.truncf %322 : vector<1x16xf32> to vector<1x16xbf16>
    %c3_150 = arith.constant 3 : index
    %c0_151 = arith.constant 0 : index
    %c0_152 = arith.constant 0 : index
    %351 = vector.load %arg1[%c3_150, %c0_151, %c0_152] : memref<4x16x16xbf16, #tpu.memory_space<vmem>>, vector<1x16x16xbf16>
    %352 = vector.shape_cast %351 : vector<1x16x16xbf16> to vector<16x16xbf16>
    %cst_153 = arith.constant dense<0.000000e+00> : vector<1x16xf32>
    %353 = tpu.matmul %350, %352, %cst_153 {dimension_numbers = #tpu.dot_dimension_numbers<[1], [0], [0], [1], [0, 0, 1, 1], [], []>} : vector<1x16xbf16>, vector<16x16xbf16>, vector<1x16xf32> -> vector<1x16xf32>
    %c34 = arith.constant 34 : index
    %354 = memref.load %arg0[%c34] : memref<50xf32, #tpu.memory_space<smem>>
    %355 = vector.broadcast %354 : f32 to vector<1x16xf32>
    %356 = arith.mulf %355, %353 : vector<1x16xf32>
    %357 = arith.addf %349, %356 : vector<1x16xf32>
    %cst_154 = arith.constant 0.000000e+00 : f32
    %358 = vector.broadcast %cst_154 : f32 to vector<1x16xf32>
    %359 = arith.cmpf oge, %357, %358 : vector<1x16xf32>
    %cst_155 = arith.constant 0.00999999977 : f32
    %360 = vector.broadcast %cst_155 : f32 to vector<1x16xf32>
    %361 = arith.mulf %360, %357 : vector<1x16xf32>
    %362 = arith.select %359, %357, %361 : vector<1x16xi1>, vector<1x16xf32>
    %cst_156 = arith.constant dense<0.000000e+00> : vector<1xf32>
    %363 = vector.multi_reduction <add>, %362, %cst_156 [1] : vector<1x16xf32> to vector<1xf32>
    %364 = vector.shape_cast %363 : vector<1xf32> to vector<1x1xf32>
    %cst_157 = arith.constant 6.250000e-02 : f32
    %365 = vector.broadcast %cst_157 : f32 to vector<1x1xf32>
    %366 = arith.mulf %364, %365 : vector<1x1xf32>
    %367 = vector.broadcast %366 : vector<1x1xf32> to vector<1x16xf32>
    %368 = arith.divf %362, %367 : vector<1x16xf32>
    %cst_158 = arith.constant dense<0.000000e+00> : vector<1xf32>
    %369 = vector.multi_reduction <add>, %368, %cst_158 [1] : vector<1x16xf32> to vector<1xf32>
    %370 = vector.shape_cast %369 : vector<1xf32> to vector<1x1xf32>
    %cst_159 = arith.constant 6.250000e-02 : f32
    %371 = vector.broadcast %cst_159 : f32 to vector<1x1xf32>
    %372 = arith.mulf %370, %371 : vector<1x1xf32>
    %373 = vector.broadcast %372 : vector<1x1xf32> to vector<1x16xf32>
    %374 = arith.subf %368, %373 : vector<1x16xf32>
    %c35 = arith.constant 35 : index
    %375 = memref.load %arg0[%c35] : memref<50xf32, #tpu.memory_space<smem>>
    %376 = vector.broadcast %375 : f32 to vector<1x16xf32>
    %377 = arith.mulf %376, %374 : vector<1x16xf32>
    %378 = arith.truncf %374 : vector<1x16xf32> to vector<1x16xbf16>
    %c0_160 = arith.constant 0 : index
    %c0_161 = arith.constant 0 : index
    %c0_162 = arith.constant 0 : index
    %379 = vector.load %arg1[%c0_160, %c0_161, %c0_162] : memref<4x16x16xbf16, #tpu.memory_space<vmem>>, vector<1x16x16xbf16>
    %380 = vector.shape_cast %379 : vector<1x16x16xbf16> to vector<16x16xbf16>
    %cst_163 = arith.constant dense<0.000000e+00> : vector<1x16xf32>
    %381 = tpu.matmul %378, %380, %cst_163 {dimension_numbers = #tpu.dot_dimension_numbers<[1], [0], [0], [1], [0, 0, 1, 1], [], []>} : vector<1x16xbf16>, vector<16x16xbf16>, vector<1x16xf32> -> vector<1x16xf32>
    %c36 = arith.constant 36 : index
    %382 = memref.load %arg0[%c36] : memref<50xf32, #tpu.memory_space<smem>>
    %383 = vector.broadcast %382 : f32 to vector<1x16xf32>
    %384 = arith.mulf %383, %381 : vector<1x16xf32>
    %385 = arith.addf %377, %384 : vector<1x16xf32>
    %386 = arith.truncf %374 : vector<1x16xf32> to vector<1x16xbf16>
    %c1_164 = arith.constant 1 : index
    %c0_165 = arith.constant 0 : index
    %c0_166 = arith.constant 0 : index
    %387 = vector.load %arg1[%c1_164, %c0_165, %c0_166] : memref<4x16x16xbf16, #tpu.memory_space<vmem>>, vector<1x16x16xbf16>
    %388 = vector.shape_cast %387 : vector<1x16x16xbf16> to vector<16x16xbf16>
    %cst_167 = arith.constant dense<0.000000e+00> : vector<1x16xf32>
    %389 = tpu.matmul %386, %388, %cst_167 {dimension_numbers = #tpu.dot_dimension_numbers<[1], [0], [0], [1], [0, 0, 1, 1], [], []>} : vector<1x16xbf16>, vector<16x16xbf16>, vector<1x16xf32> -> vector<1x16xf32>
    %c37 = arith.constant 37 : index
    %390 = memref.load %arg0[%c37] : memref<50xf32, #tpu.memory_space<smem>>
    %391 = vector.broadcast %390 : f32 to vector<1x16xf32>
    %392 = arith.mulf %391, %389 : vector<1x16xf32>
    %393 = arith.addf %385, %392 : vector<1x16xf32>
    %394 = arith.truncf %374 : vector<1x16xf32> to vector<1x16xbf16>
    %c2_168 = arith.constant 2 : index
    %c0_169 = arith.constant 0 : index
    %c0_170 = arith.constant 0 : index
    %395 = vector.load %arg1[%c2_168, %c0_169, %c0_170] : memref<4x16x16xbf16, #tpu.memory_space<vmem>>, vector<1x16x16xbf16>
    %396 = vector.shape_cast %395 : vector<1x16x16xbf16> to vector<16x16xbf16>
    %cst_171 = arith.constant dense<0.000000e+00> : vector<1x16xf32>
    %397 = tpu.matmul %394, %396, %cst_171 {dimension_numbers = #tpu.dot_dimension_numbers<[1], [0], [0], [1], [0, 0, 1, 1], [], []>} : vector<1x16xbf16>, vector<16x16xbf16>, vector<1x16xf32> -> vector<1x16xf32>
    %c38 = arith.constant 38 : index
    %398 = memref.load %arg0[%c38] : memref<50xf32, #tpu.memory_space<smem>>
    %399 = vector.broadcast %398 : f32 to vector<1x16xf32>
    %400 = arith.mulf %399, %397 : vector<1x16xf32>
    %401 = arith.addf %393, %400 : vector<1x16xf32>
    %402 = arith.truncf %374 : vector<1x16xf32> to vector<1x16xbf16>
    %c3_172 = arith.constant 3 : index
    %c0_173 = arith.constant 0 : index
    %c0_174 = arith.constant 0 : index
    %403 = vector.load %arg1[%c3_172, %c0_173, %c0_174] : memref<4x16x16xbf16, #tpu.memory_space<vmem>>, vector<1x16x16xbf16>
    %404 = vector.shape_cast %403 : vector<1x16x16xbf16> to vector<16x16xbf16>
    %cst_175 = arith.constant dense<0.000000e+00> : vector<1x16xf32>
    %405 = tpu.matmul %402, %404, %cst_175 {dimension_numbers = #tpu.dot_dimension_numbers<[1], [0], [0], [1], [0, 0, 1, 1], [], []>} : vector<1x16xbf16>, vector<16x16xbf16>, vector<1x16xf32> -> vector<1x16xf32>
    %c39 = arith.constant 39 : index
    %406 = memref.load %arg0[%c39] : memref<50xf32, #tpu.memory_space<smem>>
    %407 = vector.broadcast %406 : f32 to vector<1x16xf32>
    %408 = arith.mulf %407, %405 : vector<1x16xf32>
    %409 = arith.addf %401, %408 : vector<1x16xf32>
    %cst_176 = arith.constant 0.000000e+00 : f32
    %410 = vector.broadcast %cst_176 : f32 to vector<1x16xf32>
    %411 = arith.cmpf oge, %409, %410 : vector<1x16xf32>
    %cst_177 = arith.constant 0.00999999977 : f32
    %412 = vector.broadcast %cst_177 : f32 to vector<1x16xf32>
    %413 = arith.mulf %412, %409 : vector<1x16xf32>
    %414 = arith.select %411, %409, %413 : vector<1x16xi1>, vector<1x16xf32>
    %cst_178 = arith.constant dense<0.000000e+00> : vector<1xf32>
    %415 = vector.multi_reduction <add>, %414, %cst_178 [1] : vector<1x16xf32> to vector<1xf32>
    %416 = vector.shape_cast %415 : vector<1xf32> to vector<1x1xf32>
    %cst_179 = arith.constant 6.250000e-02 : f32
    %417 = vector.broadcast %cst_179 : f32 to vector<1x1xf32>
    %418 = arith.mulf %416, %417 : vector<1x1xf32>
    %419 = vector.broadcast %418 : vector<1x1xf32> to vector<1x16xf32>
    %420 = arith.divf %414, %419 : vector<1x16xf32>
    %cst_180 = arith.constant dense<0.000000e+00> : vector<1xf32>
    %421 = vector.multi_reduction <add>, %420, %cst_180 [1] : vector<1x16xf32> to vector<1xf32>
    %422 = vector.shape_cast %421 : vector<1xf32> to vector<1x1xf32>
    %cst_181 = arith.constant 6.250000e-02 : f32
    %423 = vector.broadcast %cst_181 : f32 to vector<1x1xf32>
    %424 = arith.mulf %422, %423 : vector<1x1xf32>
    %425 = vector.broadcast %424 : vector<1x1xf32> to vector<1x16xf32>
    %426 = arith.subf %420, %425 : vector<1x16xf32>
    %c40 = arith.constant 40 : index
    %427 = memref.load %arg0[%c40] : memref<50xf32, #tpu.memory_space<smem>>
    %428 = vector.broadcast %427 : f32 to vector<1x16xf32>
    %429 = arith.mulf %428, %426 : vector<1x16xf32>
    %430 = arith.truncf %426 : vector<1x16xf32> to vector<1x16xbf16>
    %c0_182 = arith.constant 0 : index
    %c0_183 = arith.constant 0 : index
    %c0_184 = arith.constant 0 : index
    %431 = vector.load %arg1[%c0_182, %c0_183, %c0_184] : memref<4x16x16xbf16, #tpu.memory_space<vmem>>, vector<1x16x16xbf16>
    %432 = vector.shape_cast %431 : vector<1x16x16xbf16> to vector<16x16xbf16>
    %cst_185 = arith.constant dense<0.000000e+00> : vector<1x16xf32>
    %433 = tpu.matmul %430, %432, %cst_185 {dimension_numbers = #tpu.dot_dimension_numbers<[1], [0], [0], [1], [0, 0, 1, 1], [], []>} : vector<1x16xbf16>, vector<16x16xbf16>, vector<1x16xf32> -> vector<1x16xf32>
    %c41 = arith.constant 41 : index
    %434 = memref.load %arg0[%c41] : memref<50xf32, #tpu.memory_space<smem>>
    %435 = vector.broadcast %434 : f32 to vector<1x16xf32>
    %436 = arith.mulf %435, %433 : vector<1x16xf32>
    %437 = arith.addf %429, %436 : vector<1x16xf32>
    %438 = arith.truncf %426 : vector<1x16xf32> to vector<1x16xbf16>
    %c1_186 = arith.constant 1 : index
    %c0_187 = arith.constant 0 : index
    %c0_188 = arith.constant 0 : index
    %439 = vector.load %arg1[%c1_186, %c0_187, %c0_188] : memref<4x16x16xbf16, #tpu.memory_space<vmem>>, vector<1x16x16xbf16>
    %440 = vector.shape_cast %439 : vector<1x16x16xbf16> to vector<16x16xbf16>
    %cst_189 = arith.constant dense<0.000000e+00> : vector<1x16xf32>
    %441 = tpu.matmul %438, %440, %cst_189 {dimension_numbers = #tpu.dot_dimension_numbers<[1], [0], [0], [1], [0, 0, 1, 1], [], []>} : vector<1x16xbf16>, vector<16x16xbf16>, vector<1x16xf32> -> vector<1x16xf32>
    %c42 = arith.constant 42 : index
    %442 = memref.load %arg0[%c42] : memref<50xf32, #tpu.memory_space<smem>>
    %443 = vector.broadcast %442 : f32 to vector<1x16xf32>
    %444 = arith.mulf %443, %441 : vector<1x16xf32>
    %445 = arith.addf %437, %444 : vector<1x16xf32>
    %446 = arith.truncf %426 : vector<1x16xf32> to vector<1x16xbf16>
    %c2_190 = arith.constant 2 : index
    %c0_191 = arith.constant 0 : index
    %c0_192 = arith.constant 0 : index
    %447 = vector.load %arg1[%c2_190, %c0_191, %c0_192] : memref<4x16x16xbf16, #tpu.memory_space<vmem>>, vector<1x16x16xbf16>
    %448 = vector.shape_cast %447 : vector<1x16x16xbf16> to vector<16x16xbf16>
    %cst_193 = arith.constant dense<0.000000e+00> : vector<1x16xf32>
    %449 = tpu.matmul %446, %448, %cst_193 {dimension_numbers = #tpu.dot_dimension_numbers<[1], [0], [0], [1], [0, 0, 1, 1], [], []>} : vector<1x16xbf16>, vector<16x16xbf16>, vector<1x16xf32> -> vector<1x16xf32>
    %c43 = arith.constant 43 : index
    %450 = memref.load %arg0[%c43] : memref<50xf32, #tpu.memory_space<smem>>
    %451 = vector.broadcast %450 : f32 to vector<1x16xf32>
    %452 = arith.mulf %451, %449 : vector<1x16xf32>
    %453 = arith.addf %445, %452 : vector<1x16xf32>
    %454 = arith.truncf %426 : vector<1x16xf32> to vector<1x16xbf16>
    %c3_194 = arith.constant 3 : index
    %c0_195 = arith.constant 0 : index
    %c0_196 = arith.constant 0 : index
    %455 = vector.load %arg1[%c3_194, %c0_195, %c0_196] : memref<4x16x16xbf16, #tpu.memory_space<vmem>>, vector<1x16x16xbf16>
    %456 = vector.shape_cast %455 : vector<1x16x16xbf16> to vector<16x16xbf16>
    %cst_197 = arith.constant dense<0.000000e+00> : vector<1x16xf32>
    %457 = tpu.matmul %454, %456, %cst_197 {dimension_numbers = #tpu.dot_dimension_numbers<[1], [0], [0], [1], [0, 0, 1, 1], [], []>} : vector<1x16xbf16>, vector<16x16xbf16>, vector<1x16xf32> -> vector<1x16xf32>
    %c44 = arith.constant 44 : index
    %458 = memref.load %arg0[%c44] : memref<50xf32, #tpu.memory_space<smem>>
    %459 = vector.broadcast %458 : f32 to vector<1x16xf32>
    %460 = arith.mulf %459, %457 : vector<1x16xf32>
    %461 = arith.addf %453, %460 : vector<1x16xf32>
    %cst_198 = arith.constant 0.000000e+00 : f32
    %462 = vector.broadcast %cst_198 : f32 to vector<1x16xf32>
    %463 = arith.cmpf oge, %461, %462 : vector<1x16xf32>
    %cst_199 = arith.constant 0.00999999977 : f32
    %464 = vector.broadcast %cst_199 : f32 to vector<1x16xf32>
    %465 = arith.mulf %464, %461 : vector<1x16xf32>
    %466 = arith.select %463, %461, %465 : vector<1x16xi1>, vector<1x16xf32>
    %cst_200 = arith.constant dense<0.000000e+00> : vector<1xf32>
    %467 = vector.multi_reduction <add>, %466, %cst_200 [1] : vector<1x16xf32> to vector<1xf32>
    %468 = vector.shape_cast %467 : vector<1xf32> to vector<1x1xf32>
    %cst_201 = arith.constant 6.250000e-02 : f32
    %469 = vector.broadcast %cst_201 : f32 to vector<1x1xf32>
    %470 = arith.mulf %468, %469 : vector<1x1xf32>
    %471 = vector.broadcast %470 : vector<1x1xf32> to vector<1x16xf32>
    %472 = arith.divf %466, %471 : vector<1x16xf32>
    %cst_202 = arith.constant dense<0.000000e+00> : vector<1xf32>
    %473 = vector.multi_reduction <add>, %472, %cst_202 [1] : vector<1x16xf32> to vector<1xf32>
    %474 = vector.shape_cast %473 : vector<1xf32> to vector<1x1xf32>
    %cst_203 = arith.constant 6.250000e-02 : f32
    %475 = vector.broadcast %cst_203 : f32 to vector<1x1xf32>
    %476 = arith.mulf %474, %475 : vector<1x1xf32>
    %477 = vector.broadcast %476 : vector<1x1xf32> to vector<1x16xf32>
    %478 = arith.subf %472, %477 : vector<1x16xf32>
    %c45 = arith.constant 45 : index
    %479 = memref.load %arg0[%c45] : memref<50xf32, #tpu.memory_space<smem>>
    %480 = vector.broadcast %479 : f32 to vector<1x16xf32>
    %481 = arith.mulf %480, %478 : vector<1x16xf32>
    %482 = arith.truncf %478 : vector<1x16xf32> to vector<1x16xbf16>
    %c0_204 = arith.constant 0 : index
    %c0_205 = arith.constant 0 : index
    %c0_206 = arith.constant 0 : index
    %483 = vector.load %arg1[%c0_204, %c0_205, %c0_206] : memref<4x16x16xbf16, #tpu.memory_space<vmem>>, vector<1x16x16xbf16>
    %484 = vector.shape_cast %483 : vector<1x16x16xbf16> to vector<16x16xbf16>
    %cst_207 = arith.constant dense<0.000000e+00> : vector<1x16xf32>
    %485 = tpu.matmul %482, %484, %cst_207 {dimension_numbers = #tpu.dot_dimension_numbers<[1], [0], [0], [1], [0, 0, 1, 1], [], []>} : vector<1x16xbf16>, vector<16x16xbf16>, vector<1x16xf32> -> vector<1x16xf32>
    %c46 = arith.constant 46 : index
    %486 = memref.load %arg0[%c46] : memref<50xf32, #tpu.memory_space<smem>>
    %487 = vector.broadcast %486 : f32 to vector<1x16xf32>
    %488 = arith.mulf %487, %485 : vector<1x16xf32>
    %489 = arith.addf %481, %488 : vector<1x16xf32>
    %490 = arith.truncf %478 : vector<1x16xf32> to vector<1x16xbf16>
    %c1_208 = arith.constant 1 : index
    %c0_209 = arith.constant 0 : index
    %c0_210 = arith.constant 0 : index
    %491 = vector.load %arg1[%c1_208, %c0_209, %c0_210] : memref<4x16x16xbf16, #tpu.memory_space<vmem>>, vector<1x16x16xbf16>
    %492 = vector.shape_cast %491 : vector<1x16x16xbf16> to vector<16x16xbf16>
    %cst_211 = arith.constant dense<0.000000e+00> : vector<1x16xf32>
    %493 = tpu.matmul %490, %492, %cst_211 {dimension_numbers = #tpu.dot_dimension_numbers<[1], [0], [0], [1], [0, 0, 1, 1], [], []>} : vector<1x16xbf16>, vector<16x16xbf16>, vector<1x16xf32> -> vector<1x16xf32>
    %c47 = arith.constant 47 : index
    %494 = memref.load %arg0[%c47] : memref<50xf32, #tpu.memory_space<smem>>
    %495 = vector.broadcast %494 : f32 to vector<1x16xf32>
    %496 = arith.mulf %495, %493 : vector<1x16xf32>
    %497 = arith.addf %489, %496 : vector<1x16xf32>
    %498 = arith.truncf %478 : vector<1x16xf32> to vector<1x16xbf16>
    %c2_212 = arith.constant 2 : index
    %c0_213 = arith.constant 0 : index
    %c0_214 = arith.constant 0 : index
    %499 = vector.load %arg1[%c2_212, %c0_213, %c0_214] : memref<4x16x16xbf16, #tpu.memory_space<vmem>>, vector<1x16x16xbf16>
    %500 = vector.shape_cast %499 : vector<1x16x16xbf16> to vector<16x16xbf16>
    %cst_215 = arith.constant dense<0.000000e+00> : vector<1x16xf32>
    %501 = tpu.matmul %498, %500, %cst_215 {dimension_numbers = #tpu.dot_dimension_numbers<[1], [0], [0], [1], [0, 0, 1, 1], [], []>} : vector<1x16xbf16>, vector<16x16xbf16>, vector<1x16xf32> -> vector<1x16xf32>
    %c48 = arith.constant 48 : index
    %502 = memref.load %arg0[%c48] : memref<50xf32, #tpu.memory_space<smem>>
    %503 = vector.broadcast %502 : f32 to vector<1x16xf32>
    %504 = arith.mulf %503, %501 : vector<1x16xf32>
    %505 = arith.addf %497, %504 : vector<1x16xf32>
    %506 = arith.truncf %478 : vector<1x16xf32> to vector<1x16xbf16>
    %c3_216 = arith.constant 3 : index
    %c0_217 = arith.constant 0 : index
    %c0_218 = arith.constant 0 : index
    %507 = vector.load %arg1[%c3_216, %c0_217, %c0_218] : memref<4x16x16xbf16, #tpu.memory_space<vmem>>, vector<1x16x16xbf16>
    %508 = vector.shape_cast %507 : vector<1x16x16xbf16> to vector<16x16xbf16>
    %cst_219 = arith.constant dense<0.000000e+00> : vector<1x16xf32>
    %509 = tpu.matmul %506, %508, %cst_219 {dimension_numbers = #tpu.dot_dimension_numbers<[1], [0], [0], [1], [0, 0, 1, 1], [], []>} : vector<1x16xbf16>, vector<16x16xbf16>, vector<1x16xf32> -> vector<1x16xf32>
    %c49 = arith.constant 49 : index
    %510 = memref.load %arg0[%c49] : memref<50xf32, #tpu.memory_space<smem>>
    %511 = vector.broadcast %510 : f32 to vector<1x16xf32>
    %512 = arith.mulf %511, %509 : vector<1x16xf32>
    %513 = arith.addf %505, %512 : vector<1x16xf32>
    %cst_220 = arith.constant 0.000000e+00 : f32
    %514 = vector.broadcast %cst_220 : f32 to vector<1x16xf32>
    %515 = arith.cmpf oge, %513, %514 : vector<1x16xf32>
    %cst_221 = arith.constant 0.00999999977 : f32
    %516 = vector.broadcast %cst_221 : f32 to vector<1x16xf32>
    %517 = arith.mulf %516, %513 : vector<1x16xf32>
    %518 = arith.select %515, %513, %517 : vector<1x16xi1>, vector<1x16xf32>
    %cst_222 = arith.constant dense<0.000000e+00> : vector<1xf32>
    %519 = vector.multi_reduction <add>, %518, %cst_222 [1] : vector<1x16xf32> to vector<1xf32>
    %520 = vector.shape_cast %519 : vector<1xf32> to vector<1x1xf32>
    %cst_223 = arith.constant 6.250000e-02 : f32
    %521 = vector.broadcast %cst_223 : f32 to vector<1x1xf32>
    %522 = arith.mulf %520, %521 : vector<1x1xf32>
    %523 = vector.broadcast %522 : vector<1x1xf32> to vector<1x16xf32>
    %524 = arith.divf %518, %523 : vector<1x16xf32>
    %cst_224 = arith.constant dense<0.000000e+00> : vector<1xf32>
    %525 = vector.multi_reduction <add>, %524, %cst_224 [1] : vector<1x16xf32> to vector<1xf32>
    %526 = vector.shape_cast %525 : vector<1xf32> to vector<1x1xf32>
    %cst_225 = arith.constant 6.250000e-02 : f32
    %527 = vector.broadcast %cst_225 : f32 to vector<1x1xf32>
    %528 = arith.mulf %526, %527 : vector<1x1xf32>
    %529 = vector.broadcast %528 : vector<1x1xf32> to vector<1x16xf32>
    %530 = arith.subf %524, %529 : vector<1x16xf32>
    %531 = arith.negf %530 : vector<1x16xf32>
    %532 = math.exp %531 : vector<1x16xf32>
    %cst_226 = arith.constant 1.000000e+00 : f32
    %533 = vector.broadcast %cst_226 : f32 to vector<1x16xf32>
    %534 = arith.addf %533, %532 : vector<1x16xf32>
    %535 = arith.divf %533, %534 : vector<1x16xf32>
    %c1_227 = arith.constant 1 : index
    %c0_228 = arith.constant 0 : index
    %536 = vector.load %arg3[%c1_227, %c0_228] : memref<2x16xf32, #tpu.memory_space<vmem>>, vector<1x16xf32>
    tpu.vector_store %arg3[%c1_227, %c0_228], %535 {strides = array<i32>} : memref<2x16xf32, #tpu.memory_space<vmem>>, vector<1x16xf32>,
    return
  }
}

</mosaic_0001>

<bundles_post_ra>
// kernel: tpu_custom_call.1
= control target key start
LH: loop header
LB: loop body
LE: loop exit
PB: predicated region body
PF: predicated region fallthrough
CT: control target
= control target key end

     0   :  { %8 = vsyncpa [#allocation5], 0  ;;  %s2906_s0 = inlined_call_operand.hbm [shape: f32[50], index: 0, kind: input, shape index: {}]   ;;  %s2907_s1 = inlined_call_operand.hbm [shape: bf16[4,16,16], index: 1, kind: input, shape index: {}]   ;;  %s2908_s2 = inlined_call_operand.vmem [shape: f32[1,16], index: 2, kind: input, shape index: {}]   ;;  %s2909_s3 = inlined_call_operand.hbm [shape: f32[2,16], index: 3, kind: output, shape index: {}]  }
   0x1   :  { %9 = vsyncpa [#allocation3], 0 }
   0x2   :  { %10 = vsyncpa [#allocation4], 0  ;;  %s2629_s12 = smov [#allocation2]   ;;  %s2630_s15 = smov [#allocation6]  }
   0x3   :  { %18 = dma.hbm_to_smem %s2906_s0, 16, %s2629_s12, [#allocation5]  }
   0x4   :  { %s24_s16 = sshll.u32 %s2630_s15, 4  ;;  %s25_s16 = int_to_ptr.vmem [resolvable:$true] %s24_s16 }
   0x5   :  { %s2591_s17 = scalar_lea.vmem %s25_s16, 512  ;;  %p2596_p1 = scmp.lt.s32.totalorder %s25_s16, %s25_s16 }
   0x6   :  { %p2592_p0 = scmp.ne.s32.totalorder %s25_s16, %s2591_s17  ;;  %p2597_p2 = scmp.lt.s32.totalorder %s2591_s17, %s2591_s17 }
   0x8   :  { %p2598_p3 = por %p2597_p2, %p2596_p1 }
   0xa   :  { %p2599_p4 = pnand %p2598_p3, %p2592_p0 }
   0xc   :  { %2602 = shalt.err (!%p2599_p4)
}
   0xd   :  { %s2631_s18 = smov 64   ;;  %s2632_s19 = smov 4  }
   0xe   :  { %30 = dma.hbm_to_vmem [thread:$0]  %s2907_s1, 512, %s25_s16, [#allocation3], %s2631_s18, %s2631_s18, %s2632_s19  }
   0xf   :  { %2623 = dma.done.wait [#allocation5], 16  }
  0x10   :  { %2624 = vsyncadd [#allocation5], 4294967280 }
  0x11   :  { %2625 = dma.done.wait [#allocation3], 512  }
  0x12   :  { %2626 = vsyncadd [#allocation3], 4294966784 }
  0x13   :  { %39 = sfence }
  0x14   :  { %v2662_v0 = vld [vmem:[#allocation6] sm:$0xff]   ;;  %v2633_v1 = vmov 0.0   ;;  %v2666_v2 = vld [vmem:[#allocation6 + $0x8] sm:$0xff]   ;;  %vm2634_vm0 = vmmov 0   ;;  %vm56_vm1 = vcmask 130048   ;;  %v2678_v5 = vld [vmem:[#allocation6 + $0x10] sm:$0xff]  }
  0x15   :  { %2292 = vmatprep.subr.bf16.mxu0 %v2633_v1  ;;  %2298 = vmatprep.subr.bf16.mxu1 %v2633_v1  ;;  %v41_v3 = vld [vmem:[%s2908_s2] sm:$0x1]  ;;  %v2681_v7 = vld [vmem:[#allocation6 + $0x18] sm:$0xff]   ;;  %s44_s2 = sld [smem:[#allocation2]]  ;;  %vm266_vm3 = vcmask 122880  }
  0x16   :  { %2293 = vmatpush3.bf16.msra.mxu0 %v2662_v0  ;;  %2294 = vmatprep.mubr.msk.bf16.mxu0 %vm2634_vm0, %v2633_v1  ;;  %v42_v4 = vadd.f32 1.0, %v41_v3  ;;  %s2115_s22 = sld [smem:[#allocation2 + $0x1]] }
  0x17   :  { %2299 = vmatpush3.bf16.msra.mxu1 %v2666_v2  ;;  %2300 = vmatprep.mubr.msk.bf16.mxu1 %vm2634_vm0, %v2633_v1  ;;  %s2118_s23 = sld [smem:[#allocation2 + $0x2]] }
  0x18   :  { %2304 = vmatprep.subr.bf16.mxu0 %v2633_v1  ;;  %2310 = vmatprep.subr.bf16.mxu1 %v2633_v1  ;;  %v43_v6 = vmul.f32 0.5, %v42_v4  ;;  %s2121_s24 = sld [smem:[#allocation2 + $0x3]] }
  0x19   :  { %s2124_s25 = sld [smem:[#allocation2 + $0x4]] }
  0x1a   :  { %v47_v8 = vpack.c.bf16 %v43_v6, %v43_v6  ;;  %s2127_s26 = sld [smem:[#allocation2 + $0x6]] }
  0x1b   :  { %v45_v9 = vstv %s44_s2  ;;  %s2125_s27 = sld [smem:[#allocation2 + $0x5]] }
  0x1c   :  { %2295 = vmatmul.mubr.msk.bf16.vlgmr.msra.gmra.mxu0 %vm56_vm1, %v47_v8  ;;  %2301 = vmatmul.mubr.msk.bf16.vlgmr.msra.gmra.mxu1 %vm56_vm1, %v47_v8  ;;  %v101_v10 = vstv %s2115_s22  ;;  %v46_v13 = vmul.f32 %v45_v9, %v43_v6  ;;  %s2129_s28 = sld [smem:[#allocation2 + $0x7]] }
  0x1d   :  { %2305 = vmatpush3.bf16.msra.mxu0 %v2678_v5  ;;  %2311 = vmatpush3.bf16.msra.mxu1 %v2681_v7  ;;  %v154_v15 = vstv %s2118_s23  ;;  %s2131_s29 = sld [smem:[#allocation2 + $0x8]] }
  0x1e   :  { %2306 = vmatprep.mubr.msk.bf16.mxu0 %vm2634_vm0, %v2633_v1  ;;  %2312 = vmatprep.mubr.msk.bf16.mxu1 %vm2634_vm0, %v2633_v1  ;;  %v207_v24 = vstv %s2121_s24  ;;  %s2133_s30 = sld [smem:[#allocation2 + $0x9]] }
  0x1f   :  { %2316 = vmatprep.subr.bf16.mxu0 %v2633_v1  ;;  %2322 = vmatprep.subr.bf16.mxu1 %v2633_v1  ;;  %v260_v25 = vstv %s2124_s25  ;;  %s2136_s4 = sld [smem:[#allocation2 + $0xb]] }
  0x20   :  { %v326_v51 = vstv %s2127_s26  ;;  %s2134_s5 = sld [smem:[#allocation2 + $0xa]] }
  0x21   :  { %v279_v52 = vstv %s2125_s27  ;;  %s2138_s6 = sld [smem:[#allocation2 + $0xc]] }
  0x22   :  { %v370_v59 = vstv %s2129_s28  ;;  %s2140_s7 = sld [smem:[#allocation2 + $0xd]] }
  0x23   :  { %v414_v4 = vstv %s2131_s29  ;;  %s2142_s8 = sld [smem:[#allocation2 + $0xe]] }
  0x24   :  { %2307 = vmatmul.mubr.msk.bf16.vlgmr.msra.gmra.mxu0 %vm56_vm1, %v47_v8  ;;  %2313 = vmatmul.mubr.msk.bf16.vlgmr.msra.gmra.mxu1 %vm56_vm1, %v47_v8  ;;  %s2145_s9 = sld [smem:[#allocation2 + $0x10]] }
  0x25   :  { %2317 = vmatpush3.bf16.msra.mxu0 %v2662_v0  ;;  %2323 = vmatpush3.bf16.msra.mxu1 %v2666_v2  ;;  %s2143_s10 = sld [smem:[#allocation2 + $0xf]] }
  0x26   :  { %2318 = vmatprep.mubr.msk.bf16.mxu0 %vm2634_vm0, %v2633_v1  ;;  %2324 = vmatprep.mubr.msk.bf16.mxu1 %vm2634_vm0, %v2633_v1  ;;  %s2147_s11 = sld [smem:[#allocation2 + $0x11]] }
  0x27   :  { %2328 = vmatprep.subr.bf16.mxu0 %v2633_v1  ;;  %2334 = vmatprep.subr.bf16.mxu1 %v2633_v1  ;;  %s2149_s12 = sld [smem:[#allocation2 + $0x12]] }
  0x28   :  { %s2151_s13 = sld [smem:[#allocation2 + $0x13]] }
  0x29   :  { %s2154_s14 = sld [smem:[#allocation2 + $0x15]] }
  0x2a   :  { %s2152_s15 = sld [smem:[#allocation2 + $0x14]] }
  0x2b   :  { %s2156_s16 = sld [smem:[#allocation2 + $0x16]] }
  0x2c   :  { %s2158_s17 = sld [smem:[#allocation2 + $0x17]] }
  0x2d   :  { %s2160_s18 = sld [smem:[#allocation2 + $0x18]] }
  0x2e   :  { %s2165_s19 = sld [smem:[#allocation2 + $0x1a]] }
  0x2f   :  { %s2162_s20 = sld [smem:[#allocation2 + $0x19]] }
  0x30   :  { %s2168_s21 = sld [smem:[#allocation2 + $0x1b]] }
  0x31   :  { %s2171_s0 = sld [smem:[#allocation2 + $0x1c]] }
  0x32   :  { %s2174_s1 = sld [smem:[#allocation2 + $0x1d]] }
  0x33   :  { %s2177_s2 = sld [smem:[#allocation2 + $0x1f]] }
  0x34   :  { %s2175_s22 = sld [smem:[#allocation2 + $0x1e]] }
  0x35   :  { %s2179_s23 = sld [smem:[#allocation2 + $0x20]] }
  0x36   :  { %s2181_s24 = sld [smem:[#allocation2 + $0x21]] }
  0x37   :  { %s2183_s25 = sld [smem:[#allocation2 + $0x22]] }
  0x38   :  { %s2186_s26 = sld [smem:[#allocation2 + $0x24]] }
  0x39   :  { %s2184_s27 = sld [smem:[#allocation2 + $0x23]] }
  0x3a   :  { %s2188_s28 = sld [smem:[#allocation2 + $0x25]] }
  0x3b   :  { %s2190_s29 = sld [smem:[#allocation2 + $0x26]] }
  0xdc   :  { %v94_v11 = vpop.f32.mrf.mxu0  ;;  %v147_v12 = vpop.f32.mrf.mxu1 }
  0xdd   :  { %v102_v14 = vmul.f32 %v101_v10, %v94_v11  ;;  %v155_v21 = vmul.f32 %v154_v15, %v147_v12  ;;  %v458_v10 = vstv %s2133_s30  ;;  %s2192_s30 = sld [smem:[#allocation2 + $0x27]] }
  0xde   :  { %v2296_v16 = vpop.f32.mrf.mxu0  ;;  %v2302_v17 = vpop.f32.mrf.mxu1 }
  0xdf   :  { %v103_v20 = vadd.f32 %v102_v14, %v46_v13 }
  0xe0   :  { %v97_v18 = vpop.f32.mrf.mxu0  ;;  %v150_v19 = vpop.f32.mrf.mxu1 }
  0xe1   :  { %v156_v28 = vadd.f32 %v155_v21, %v103_v20 }
  0xe2   :  { %v2297_v22 = vpop.f32.mrf.mxu0  ;;  %v2303_v23 = vpop.f32.mrf.mxu1 }
  0xe4   :  { %v200_v26 = vpop.f32.mrf.mxu0  ;;  %v253_v27 = vpop.f32.mrf.mxu1 }
  0xe5   :  { %v208_v29 = vmul.f32 %v207_v24, %v200_v26  ;;  %v261_v30 = vmul.f32 %v260_v25, %v253_v27 }
  0xe6   :  { %v2308_v31 = vpop.f32.mrf.mxu0  ;;  %v2314_v32 = vpop.f32.mrf.mxu1 }
  0xe7   :  { %v209_v33 = vadd.f32 %v208_v29, %v156_v28 }
  0xe8   :  { %v203_v34 = vpop.f32.mrf.mxu0  ;;  %v256_v35 = vpop.f32.mrf.mxu1 }
  0xe9   :  { %v262_v36 = vadd.f32 %v261_v30, %v209_v33  ;;  %v523_v34 = vstv %s2136_s4  ;;  %v476_v35 = vstv %s2134_s5  ;;  %s2195_s4 = sld [smem:[#allocation2 + $0x29]] }
  0xea   :  { %v2309_v37 = vpop.f32.mrf.mxu0  ;;  %v2315_v38 = vpop.f32.mrf.mxu1  ;;  %s2193_s5 = sld [smem:[#allocation2 + $0x28]] }
  0xeb   :  { %vm263_vm2 = vcmp.ge.f32.partialorder %v262_v36, 0.0  ;;  %v264_v39 = vmul.f32 0.01, %v262_v36 }
  0xed   :  { %v265_v40 = vsel %vm263_vm2, %v262_v36, %v264_v39 }
  0xee   :  { %v267_v41 = vsel %vm266_vm3, %v265_v40, 0.0 }
  0xef   :  { %268 = vadd.xlane.f32.xlu0 %v267_v41 }
 0x178   :  { %v269_v42 = vpop.xlane.xlu0 %268 }
 0x179   :  { %v270_v43 = vmul.f32 0.0625, %v269_v42  ;;  %v567_v42 = vstv %s2138_s6  ;;  %s2197_s6 = sld [smem:[#allocation2 + $0x2a]] }
 0x17b   :  { %2547 = vrcp.f32 %v270_v43 }
 0x188   :  { %v2548_v44 = vpop.eup %2547 }
 0x189   :  { %v272_v45 = vmul.f32 %v2548_v44, %v265_v40 }
 0x18b   :  { %v273_v46 = vsel %vm266_vm3, %v272_v45, 0.0 }
 0x18c   :  { %274 = vadd.xlane.f32.xlu0 %v273_v46 }
 0x215   :  { %v275_v47 = vpop.xlane.xlu0 %274 }
 0x216   :  { %v276_v48 = vmul.f32 0.0625, %v275_v47 }
 0x218   :  { %v277_v49 = vsub.f32 %v272_v45, %v276_v48  ;;  %v611_v48 = vstv %s2140_s7  ;;  %s2199_s7 = sld [smem:[#allocation2 + $0x2b]] }
 0x21a   :  { %v281_v50 = vpack.c.bf16 %v277_v49, %v277_v49  ;;  %v280_v58 = vmul.f32 %v279_v52, %v277_v49  ;;  %v655_v52 = vstv %s2142_s8  ;;  %s2201_s8 = sld [smem:[#allocation2 + $0x2c]] }
 0x21c   :  { %2319 = vmatmul.mubr.msk.bf16.vlgmr.msra.gmra.mxu0 %vm56_vm1, %v281_v50  ;;  %2325 = vmatmul.mubr.msk.bf16.vlgmr.msra.gmra.mxu1 %vm56_vm1, %v281_v50 }
 0x21d   :  { %2329 = vmatpush3.bf16.msra.mxu0 %v2678_v5  ;;  %2335 = vmatpush3.bf16.msra.mxu1 %v2681_v7 }
 0x21e   :  { %2330 = vmatprep.mubr.msk.bf16.mxu0 %vm2634_vm0, %v2633_v1  ;;  %2336 = vmatprep.mubr.msk.bf16.mxu1 %vm2634_vm0, %v2633_v1 }
 0x21f   :  { %2340 = vmatprep.subr.bf16.mxu0 %v2633_v1  ;;  %2346 = vmatprep.subr.bf16.mxu1 %v2633_v1 }
 0x224   :  { %2331 = vmatmul.mubr.msk.bf16.vlgmr.msra.gmra.mxu0 %vm56_vm1, %v281_v50  ;;  %2337 = vmatmul.mubr.msk.bf16.vlgmr.msra.gmra.mxu1 %vm56_vm1, %v281_v50 }
 0x225   :  { %2341 = vmatpush3.bf16.msra.mxu0 %v2662_v0  ;;  %2347 = vmatpush3.bf16.msra.mxu1 %v2666_v2 }
 0x226   :  { %2342 = vmatprep.mubr.msk.bf16.mxu0 %vm2634_vm0, %v2633_v1  ;;  %2348 = vmatprep.mubr.msk.bf16.mxu1 %vm2634_vm0, %v2633_v1 }
 0x227   :  { %2352 = vmatprep.subr.bf16.mxu0 %v2633_v1  ;;  %2358 = vmatprep.subr.bf16.mxu1 %v2633_v1 }
 0x2dc   :  { %v319_v53 = vpop.f32.mrf.mxu0  ;;  %v363_v54 = vpop.f32.mrf.mxu1 }
 0x2dd   :  { %v327_v55 = vmul.f32 %v326_v51, %v319_v53  ;;  %v371_v6 = vmul.f32 %v370_v59, %v363_v54 }
 0x2de   :  { %v2320_v56 = vpop.f32.mrf.mxu0  ;;  %v2326_v57 = vpop.f32.mrf.mxu1 }
 0x2df   :  { %v328_v62 = vadd.f32 %v327_v55, %v280_v58 }
 0x2e0   :  { %v322_v60 = vpop.f32.mrf.mxu0  ;;  %v366_v61 = vpop.f32.mrf.mxu1 }
 0x2e1   :  { %v372_v11 = vadd.f32 %v371_v6, %v328_v62 }
 0x2e2   :  { %v2321_v63 = vpop.f32.mrf.mxu0  ;;  %v2327_v3 = vpop.f32.mrf.mxu1 }
 0x2e4   :  { %v407_v8 = vpop.f32.mrf.mxu0  ;;  %v451_v9 = vpop.f32.mrf.mxu1 }
 0x2e5   :  { %v415_v12 = vmul.f32 %v414_v4, %v407_v8  ;;  %v459_v16 = vmul.f32 %v458_v10, %v451_v9 }
 0x2e6   :  { %v2332_v13 = vpop.f32.mrf.mxu0  ;;  %v2338_v14 = vpop.f32.mrf.mxu1 }
 0x2e7   :  { %v416_v15 = vadd.f32 %v415_v12, %v372_v11 }
 0x2e8   :  { %v410_v17 = vpop.f32.mrf.mxu0  ;;  %v454_v18 = vpop.f32.mrf.mxu1 }
 0x2e9   :  { %v460_v19 = vadd.f32 %v459_v16, %v416_v15  ;;  %v720_v17 = vstv %s2145_s9  ;;  %v673_v18 = vstv %s2143_s10  ;;  %s2204_s9 = sld [smem:[#allocation2 + $0x2e]] }
 0x2ea   :  { %v2333_v20 = vpop.f32.mrf.mxu0  ;;  %v2339_v21 = vpop.f32.mrf.mxu1  ;;  %s2202_s10 = sld [smem:[#allocation2 + $0x2d]] }
 0x2eb   :  { %vm461_vm4 = vcmp.ge.f32.partialorder %v460_v19, 0.0  ;;  %v462_v22 = vmul.f32 0.01, %v460_v19 }
 0x2ed   :  { %v463_v23 = vsel %vm461_vm4, %v460_v19, %v462_v22 }
 0x2ee   :  { %v464_v24 = vsel %vm266_vm3, %v463_v23, 0.0 }
 0x2ef   :  { %465 = vadd.xlane.f32.xlu1 %v464_v24 }
 0x378   :  { %v466_v25 = vpop.xlane.xlu1 %465 }
 0x379   :  { %v467_v26 = vmul.f32 0.0625, %v466_v25 }
 0x37b   :  { %2549 = vrcp.f32 %v467_v26 }
 0x388   :  { %v2550_v27 = vpop.eup %2549 }
 0x389   :  { %v469_v28 = vmul.f32 %v2550_v27, %v463_v23  ;;  %v764_v23 = vstv %s2147_s11  ;;  %s2206_s11 = sld [smem:[#allocation2 + $0x2f]] }
 0x38b   :  { %v470_v29 = vsel %vm266_vm3, %v469_v28, 0.0 }
 0x38c   :  { %471 = vadd.xlane.f32.xlu1 %v470_v29  ;;  %v808_v29 = vstv %s2149_s12  ;;  %s2208_s12 = sld [smem:[#allocation2 + $0x30]] }
 0x415   :  { %v472_v30 = vpop.xlane.xlu1 %471 }
 0x416   :  { %v473_v31 = vmul.f32 0.0625, %v472_v30 }
 0x418   :  { %v474_v32 = vsub.f32 %v469_v28, %v473_v31 }
 0x41a   :  { %v478_v33 = vpack.c.bf16 %v474_v32, %v474_v32  ;;  %v477_v41 = vmul.f32 %v476_v35, %v474_v32 }
 0x41c   :  { %2343 = vmatmul.mubr.msk.bf16.vlgmr.msra.gmra.mxu0 %vm56_vm1, %v478_v33  ;;  %2349 = vmatmul.mubr.msk.bf16.vlgmr.msra.gmra.mxu1 %vm56_vm1, %v478_v33 }
 0x41d   :  { %2353 = vmatpush3.bf16.msra.mxu0 %v2678_v5  ;;  %2359 = vmatpush3.bf16.msra.mxu1 %v2681_v7 }
 0x41e   :  { %2354 = vmatprep.mubr.msk.bf16.mxu0 %vm2634_vm0, %v2633_v1  ;;  %2360 = vmatprep.mubr.msk.bf16.mxu1 %vm2634_vm0, %v2633_v1 }
 0x41f   :  { %2364 = vmatprep.subr.bf16.mxu0 %v2633_v1  ;;  %2370 = vmatprep.subr.bf16.mxu1 %v2633_v1 }
 0x424   :  { %2355 = vmatmul.mubr.msk.bf16.vlgmr.msra.gmra.mxu0 %vm56_vm1, %v478_v33  ;;  %2361 = vmatmul.mubr.msk.bf16.vlgmr.msra.gmra.mxu1 %vm56_vm1, %v478_v33  ;;  %v852_v33 = vstv %s2151_s13  ;;  %s2210_s13 = sld [smem:[#allocation2 + $0x31]] }
 0x425   :  { %2365 = vmatpush3.bf16.msra.mxu0 %v2662_v0  ;;  %2371 = vmatpush3.bf16.msra.mxu1 %v2666_v2 }
 0x426   :  { %2366 = vmatprep.mubr.msk.bf16.mxu0 %vm2634_vm0, %v2633_v1  ;;  %2372 = vmatprep.mubr.msk.bf16.mxu1 %vm2634_vm0, %v2633_v1 }
 0x427   :  { %2376 = vmatprep.subr.bf16.mxu0 %v2633_v1  ;;  %2382 = vmatprep.subr.bf16.mxu1 %v2633_v1 }
 0x4dc   :  { %v516_v36 = vpop.f32.mrf.mxu0  ;;  %v560_v37 = vpop.f32.mrf.mxu1 }
 0x4dd   :  { %v524_v38 = vmul.f32 %v523_v34, %v516_v36  ;;  %v568_v49 = vmul.f32 %v567_v42, %v560_v37 }
 0x4de   :  { %v2344_v39 = vpop.f32.mrf.mxu0  ;;  %v2350_v40 = vpop.f32.mrf.mxu1 }
 0x4df   :  { %v525_v45 = vadd.f32 %v524_v38, %v477_v41 }
 0x4e0   :  { %v519_v43 = vpop.f32.mrf.mxu0  ;;  %v563_v44 = vpop.f32.mrf.mxu1 }
 0x4e1   :  { %v569_v53 = vadd.f32 %v568_v49, %v525_v45 }
 0x4e2   :  { %v2345_v46 = vpop.f32.mrf.mxu0  ;;  %v2351_v47 = vpop.f32.mrf.mxu1 }
 0x4e4   :  { %v604_v50 = vpop.f32.mrf.mxu0  ;;  %v648_v51 = vpop.f32.mrf.mxu1 }
 0x4e5   :  { %v612_v54 = vmul.f32 %v611_v48, %v604_v50  ;;  %v656_v58 = vmul.f32 %v655_v52, %v648_v51 }
 0x4e6   :  { %v2356_v55 = vpop.f32.mrf.mxu0  ;;  %v2362_v56 = vpop.f32.mrf.mxu1 }
 0x4e7   :  { %v613_v57 = vadd.f32 %v612_v54, %v569_v53 }
 0x4e8   :  { %v607_v59 = vpop.f32.mrf.mxu0  ;;  %v651_v60 = vpop.f32.mrf.mxu1 }
 0x4e9   :  { %v657_v61 = vadd.f32 %v656_v58, %v613_v57 }
 0x4ea   :  { %v2357_v62 = vpop.f32.mrf.mxu0  ;;  %v2363_v63 = vpop.f32.mrf.mxu1 }
 0x4eb   :  { %vm658_vm5 = vcmp.ge.f32.partialorder %v657_v61, 0.0  ;;  %v659_v3 = vmul.f32 0.01, %v657_v61  ;;  %v961_v63 = vstv %s2156_s16 }
 0x4ed   :  { %v660_v4 = vsel %vm658_vm5, %v657_v61, %v659_v3 }
 0x4ee   :  { %v661_v6 = vsel %vm266_vm3, %v660_v4, 0.0 }
 0x4ef   :  { %662 = vadd.xlane.f32.xlu0 %v661_v6 }
 0x578   :  { %v663_v8 = vpop.xlane.xlu0 %662 }
 0x579   :  { %v664_v9 = vmul.f32 0.0625, %v663_v8 }
 0x57b   :  { %2551 = vrcp.f32 %v664_v9 }
 0x588   :  { %v2552_v10 = vpop.eup %2551 }
 0x589   :  { %v666_v11 = vmul.f32 %v2552_v10, %v660_v4  ;;  %v1005_v10 = vstv %s2158_s17 }
 0x58b   :  { %v667_v12 = vsel %vm266_vm3, %v666_v11, 0.0 }
 0x58c   :  { %668 = vadd.xlane.f32.xlu1 %v667_v12 }
 0x615   :  { %v669_v13 = vpop.xlane.xlu1 %668 }
 0x616   :  { %v670_v14 = vmul.f32 0.0625, %v669_v13 }
 0x618   :  { %v671_v15 = vsub.f32 %v666_v11, %v670_v14  ;;  %v1049_v14 = vstv %s2160_s18 }
 0x61a   :  { %v675_v16 = vpack.c.bf16 %v671_v15, %v671_v15  ;;  %v674_v22 = vmul.f32 %v673_v18, %v671_v15 }
 0x61c   :  { %2367 = vmatmul.mubr.msk.bf16.vlgmr.msra.gmra.mxu0 %vm56_vm1, %v675_v16  ;;  %2373 = vmatmul.mubr.msk.bf16.vlgmr.msra.gmra.mxu1 %vm56_vm1, %v675_v16 }
 0x61d   :  { %2377 = vmatpush3.bf16.msra.mxu0 %v2678_v5  ;;  %2383 = vmatpush3.bf16.msra.mxu1 %v2681_v7 }
 0x61e   :  { %2378 = vmatprep.mubr.msk.bf16.mxu0 %vm2634_vm0, %v2633_v1  ;;  %2384 = vmatprep.mubr.msk.bf16.mxu1 %vm2634_vm0, %v2633_v1 }
 0x61f   :  { %2388 = vmatprep.subr.bf16.mxu0 %v2633_v1  ;;  %2394 = vmatprep.subr.bf16.mxu1 %v2633_v1 }
 0x624   :  { %2379 = vmatmul.mubr.msk.bf16.vlgmr.msra.gmra.mxu0 %vm56_vm1, %v675_v16  ;;  %2385 = vmatmul.mubr.msk.bf16.vlgmr.msra.gmra.mxu1 %vm56_vm1, %v675_v16 }
 0x625   :  { %2389 = vmatpush3.bf16.msra.mxu0 %v2662_v0  ;;  %2395 = vmatpush3.bf16.msra.mxu1 %v2666_v2 }
 0x626   :  { %2390 = vmatprep.mubr.msk.bf16.mxu0 %vm2634_vm0, %v2633_v1  ;;  %2396 = vmatprep.mubr.msk.bf16.mxu1 %vm2634_vm0, %v2633_v1 }
 0x627   :  { %2400 = vmatprep.subr.bf16.mxu0 %v2633_v1  ;;  %2406 = vmatprep.subr.bf16.mxu1 %v2633_v1 }
 0x6dc   :  { %v713_v19 = vpop.f32.mrf.mxu0  ;;  %v757_v0 = vpop.f32.mrf.mxu1 }
 0x6dd   :  { %v721_v2 = vmul.f32 %v720_v17, %v713_v19  ;;  %v765_v30 = vmul.f32 %v764_v23, %v757_v0 }
 0x6de   :  { %v2368_v20 = vpop.f32.mrf.mxu0  ;;  %v2374_v21 = vpop.f32.mrf.mxu1 }
 0x6df   :  { %v722_v26 = vadd.f32 %v721_v2, %v674_v22 }
 0x6e0   :  { %v716_v24 = vpop.f32.mrf.mxu0  ;;  %v760_v25 = vpop.f32.mrf.mxu1 }
 0x6e1   :  { %v766_v34 = vadd.f32 %v765_v30, %v722_v26 }
 0x6e2   :  { %v2369_v27 = vpop.f32.mrf.mxu0  ;;  %v2375_v28 = vpop.f32.mrf.mxu1 }
 0x6e3   :  { %v2788_v27 = vld [vmem:[#allocation6] sm:$0xff]  }
 0x6e4   :  { %v801_v31 = vpop.f32.mrf.mxu0  ;;  %v845_v32 = vpop.f32.mrf.mxu1 }
 0x6e5   :  { %v809_v35 = vmul.f32 %v808_v29, %v801_v31  ;;  %v853_v39 = vmul.f32 %v852_v33, %v845_v32  ;;  %v2793_v33 = vld [vmem:[#allocation6 + $0x8] sm:$0xff]  }
 0x6e6   :  { %v2380_v36 = vpop.f32.mrf.mxu0  ;;  %v2386_v37 = vpop.f32.mrf.mxu1 }
 0x6e7   :  { %v810_v38 = vadd.f32 %v809_v35, %v766_v34  ;;  %v2797_v37 = vld [vmem:[#allocation6 + $0x10] sm:$0xff]  }
 0x6e8   :  { %v804_v40 = vpop.f32.mrf.mxu0  ;;  %v848_v41 = vpop.f32.mrf.mxu1 }
 0x6e9   :  { %v854_v42 = vadd.f32 %v853_v39, %v810_v38  ;;  %v2799_v38 = vld [vmem:[#allocation6 + $0x18] sm:$0xff]  }
 0x6ea   :  { %v2381_v43 = vpop.f32.mrf.mxu0  ;;  %v2387_v44 = vpop.f32.mrf.mxu1 }
 0x6eb   :  { %vm855_vm6 = vcmp.ge.f32.partialorder %v854_v42, 0.0  ;;  %v856_v45 = vmul.f32 0.01, %v854_v42  ;;  %v1129_v44 = vstv %s2165_s19 }
 0x6ed   :  { %v857_v46 = vsel %vm855_vm6, %v854_v42, %v856_v45  ;;  %v1074_v45 = vstv %s2162_s20 }
 0x6ee   :  { %v858_v47 = vsel %vm266_vm3, %v857_v46, 0.0 }
 0x6ef   :  { %859 = vadd.xlane.f32.xlu0 %v858_v47 }
 0x778   :  { %v860_v48 = vpop.xlane.xlu0 %859 }
 0x779   :  { %v861_v49 = vmul.f32 0.0625, %v860_v48 }
 0x77b   :  { %2553 = vrcp.f32 %v861_v49 }
 0x788   :  { %v2554_v50 = vpop.eup %2553 }
 0x789   :  { %v863_v51 = vmul.f32 %v2554_v50, %v857_v46 }
 0x78b   :  { %v864_v52 = vsel %vm266_vm3, %v863_v51, 0.0 }
 0x78c   :  { %865 = vadd.xlane.f32.xlu1 %v864_v52  ;;  %v1181_v52 = vstv %s2168_s21 }
 0x815   :  { %v866_v53 = vpop.xlane.xlu1 %865 }
 0x816   :  { %v867_v54 = vmul.f32 0.0625, %v866_v53 }
 0x818   :  { %v868_v55 = vsub.f32 %v863_v51, %v867_v54 }
 0x81a   :  { %v872_v56 = vpack.c.bf16 %v868_v55, %v868_v55 }
 0x81c   :  { %2391 = vmatmul.mubr.msk.bf16.vlgmr.msra.gmra.mxu0 %vm56_vm1, %v872_v56  ;;  %2397 = vmatmul.mubr.msk.bf16.vlgmr.msra.gmra.mxu1 %vm56_vm1, %v872_v56 }
 0x81d   :  { %2401 = vmatpush3.bf16.msra.mxu0 %v2678_v5  ;;  %2407 = vmatpush3.bf16.msra.mxu1 %v2681_v7  ;;  %v917_v5 = vstv %s2154_s14  ;;  %v870_v7 = vstv %s2152_s15  ;;  %s2635_s14 = smov [#allocation7]  }
 0x81e   :  { %2402 = vmatprep.mubr.msk.bf16.mxu0 %vm2634_vm0, %v2633_v1  ;;  %2408 = vmatprep.mubr.msk.bf16.mxu1 %vm2634_vm0, %v2633_v1  ;;  %v871_v62 = vmul.f32 %v870_v7, %v868_v55  ;;  %v1233_v7 = vstv %s2171_s0  ;;  %s2103_s15 = sshll.u32 %s2635_s14, 4  ;;  %s2104_s15 = int_to_ptr.vmem [resolvable:$true] %s2103_s15 }
 0x81f   :  { %2412 = vmatprep.subr.bf16.mxu0 %v2633_v1  ;;  %2418 = vmatprep.subr.bf16.mxu1 %v2633_v1  ;;  %s2603_s16 = scalar_lea.vmem %s2104_s15, 32  ;;  %p2608_p6 = scmp.lt.s32.totalorder %s2104_s15, %s2104_s15 }
 0x820   :  { %p2604_p5 = scmp.ne.s32.totalorder %s2104_s15, %s2603_s16  ;;  %p2609_p7 = scmp.lt.s32.totalorder %s2603_s16, %s2603_s16 }
 0x822   :  { %p2610_p8 = por %p2609_p7, %p2608_p6 }
 0x824   :  { %2403 = vmatmul.mubr.msk.bf16.vlgmr.msra.gmra.mxu0 %vm56_vm1, %v872_v56  ;;  %2409 = vmatmul.mubr.msk.bf16.vlgmr.msra.gmra.mxu1 %vm56_vm1, %v872_v56  ;;  %p2611_p9 = pnand %p2610_p8, %p2604_p5 }
 0x825   :  { %2414 = vmatprep.mubr.msk.bf16.mxu0 %vm2634_vm0, %v2633_v1  ;;  %2420 = vmatprep.mubr.msk.bf16.mxu1 %vm2634_vm0, %v2633_v1 }
 0x826   :  { %2413 = vmatpush3.bf16.msra.mxu0 %v2788_v27  ;;  %2419 = vmatpush3.bf16.msra.mxu1 %v2793_v33 }
 0x827   :  { %2424 = vmatprep.subr.bf16.mxu0 %v2633_v1  ;;  %2430 = vmatprep.subr.bf16.mxu1 %v2633_v1 }
 0x8dc   :  { %v910_v57 = vpop.f32.mrf.mxu0  ;;  %v954_v58 = vpop.f32.mrf.mxu1 }
 0x8dd   :  { %v918_v59 = vmul.f32 %v917_v5, %v910_v57  ;;  %v962_v11 = vmul.f32 %v961_v63, %v954_v58 }
 0x8de   :  { %v2392_v60 = vpop.f32.mrf.mxu0  ;;  %v2398_v61 = vpop.f32.mrf.mxu1 }
 0x8df   :  { %v919_v6 = vadd.f32 %v918_v59, %v871_v62  ;;  %v1285_v60 = vstv %s2174_s1 }
 0x8e0   :  { %v913_v3 = vpop.f32.mrf.mxu0  ;;  %v957_v4 = vpop.f32.mrf.mxu1 }
 0x8e1   :  { %v963_v15 = vadd.f32 %v962_v11, %v919_v6 }
 0x8e2   :  { %v2393_v8 = vpop.f32.mrf.mxu0  ;;  %v2399_v9 = vpop.f32.mrf.mxu1 }
 0x8e4   :  { %v998_v12 = vpop.f32.mrf.mxu0  ;;  %v1042_v13 = vpop.f32.mrf.mxu1 }
 0x8e5   :  { %v1006_v16 = vmul.f32 %v1005_v10, %v998_v12  ;;  %v1050_v0 = vmul.f32 %v1049_v14, %v1042_v13 }
 0x8e6   :  { %v2404_v17 = vpop.f32.mrf.mxu0  ;;  %v2410_v18 = vpop.f32.mrf.mxu1 }
 0x8e7   :  { %v1007_v19 = vadd.f32 %v1006_v16, %v963_v15 }
 0x8e8   :  { %v1001_v2 = vpop.f32.mrf.mxu0  ;;  %v1045_v20 = vpop.f32.mrf.mxu1 }
 0x8e9   :  { %v1051_v21 = vadd.f32 %v1050_v0, %v1007_v19 }
 0x8ea   :  { %v2405_v22 = vpop.f32.mrf.mxu0  ;;  %v2411_v23 = vpop.f32.mrf.mxu1 }
 0x8eb   :  { %vm1052_vm7 = vcmp.ge.f32.partialorder %v1051_v21, 0.0  ;;  %v1053_v24 = vmul.f32 0.01, %v1051_v21  ;;  %v1350_v23 = vstv %s2177_s2 }
 0x8ed   :  { %v1054_v25 = vsel %vm1052_vm7, %v1051_v21, %v1053_v24  ;;  %v1303_v24 = vstv %s2175_s22 }
 0x8ee   :  { %v1055_v26 = vsel %vm266_vm3, %v1054_v25, 0.0 }
 0x8ef   :  { %1056 = vadd.xlane.f32.xlu0 %v1055_v26 }
 0x978   :  { %v1057_v28 = vpop.xlane.xlu0 %1056 }
 0x979   :  { %v1058_v29 = vmul.f32 0.0625, %v1057_v28 }
 0x97b   :  { %2555 = vrcp.f32 %v1058_v29 }
 0x988   :  { %v2556_v30 = vpop.eup %2555 }
 0x989   :  { %v1060_v31 = vmul.f32 %v2556_v30, %v1054_v25 }
 0x98b   :  { %v1061_v32 = vsel %vm266_vm3, %v1060_v31, 0.0 }
 0x98c   :  { %1062 = vadd.xlane.f32.xlu1 %v1061_v32  ;;  %v1394_v32 = vstv %s2179_s23 }
 0xa15   :  { %v1063_v34 = vpop.xlane.xlu1 %1062 }
 0xa16   :  { %v1064_v35 = vmul.f32 0.0625, %v1063_v34 }
 0xa18   :  { %v1065_v36 = vsub.f32 %v1060_v31, %v1064_v35 }
 0xa1a   :  { %v2161_v39 = vmul.f32 -1.442695, %v1065_v36  ;;  %v1076_v40 = vpack.c.bf16 %v1065_v36, %v1065_v36  ;;  %v1075_v51 = vmul.f32 %v1074_v45, %v1065_v36  ;;  %v1482_v45 = vstv %s2183_s25 }
 0xa1c   :  { %2557 = vpow2.f32 %v2161_v39  ;;  %2415 = vmatmul.mubr.msk.bf16.vlgmr.msra.gmra.mxu0 %vm56_vm1, %v1076_v40  ;;  %2421 = vmatmul.mubr.msk.bf16.vlgmr.msra.gmra.mxu1 %vm56_vm1, %v1076_v40 }
 0xa1d   :  { %2425 = vmatpush3.bf16.msra.mxu0 %v2797_v37  ;;  %2431 = vmatpush3.bf16.msra.mxu1 %v2799_v38 }
 0xa1e   :  { %2426 = vmatprep.mubr.msk.bf16.mxu0 %vm2634_vm0, %v2633_v1  ;;  %2432 = vmatprep.mubr.msk.bf16.mxu1 %vm2634_vm0, %v2633_v1 }
 0xa1f   :  { %2436 = vmatprep.subr.bf16.mxu0 %v2633_v1  ;;  %2442 = vmatprep.subr.bf16.mxu1 %v2633_v1 }
 0xa24   :  { %2427 = vmatmul.mubr.msk.bf16.vlgmr.msra.gmra.mxu0 %vm56_vm1, %v1076_v40  ;;  %2433 = vmatmul.mubr.msk.bf16.vlgmr.msra.gmra.mxu1 %vm56_vm1, %v1076_v40 }
 0xa25   :  { %2437 = vmatpush3.bf16.msra.mxu0 %v2788_v27  ;;  %2443 = vmatpush3.bf16.msra.mxu1 %v2793_v33 }
 0xa26   :  { %2438 = vmatprep.mubr.msk.bf16.mxu0 %vm2634_vm0, %v2633_v1  ;;  %2444 = vmatprep.mubr.msk.bf16.mxu1 %vm2634_vm0, %v2633_v1 }
 0xa27   :  { %2448 = vmatprep.subr.bf16.mxu0 %v2633_v1  ;;  %2454 = vmatprep.subr.bf16.mxu1 %v2633_v1 }
 0xa29   :  { %v2558_v41 = vpop.eup %2557 }
 0xa2a   :  { %v1069_v42 = vadd.f32 1.0, %v2558_v41  ;;  %v1438_v41 = vstv %s2181_s24 }
 0xa2c   :  { %2559 = vrcp.f32 %v1069_v42 }
 0xa39   :  { %v2560_v43 = vpop.eup %2559 }
 0xa3a   :  { %1072 = vst.msk [vmem:[#allocation7] sm:$0x1] %vm266_vm3, %v2560_v43 }
 0xadc   :  { %v1122_v46 = vpop.f32.mrf.mxu0  ;;  %v1174_v47 = vpop.f32.mrf.mxu1 }
 0xadd   :  { %v1130_v48 = vmul.f32 %v1129_v44, %v1122_v46  ;;  %v1182_v57 = vmul.f32 %v1181_v52, %v1174_v47 }
 0xade   :  { %v2416_v49 = vpop.f32.mrf.mxu0  ;;  %v2422_v50 = vpop.f32.mrf.mxu1 }
 0xadf   :  { %v1131_v55 = vadd.f32 %v1130_v48, %v1075_v51 }
 0xae0   :  { %v1125_v53 = vpop.f32.mrf.mxu0  ;;  %v1177_v54 = vpop.f32.mrf.mxu1 }
 0xae1   :  { %v1183_v61 = vadd.f32 %v1182_v57, %v1131_v55 }
 0xae2   :  { %v2417_v56 = vpop.f32.mrf.mxu0  ;;  %v2423_v5 = vpop.f32.mrf.mxu1 }
 0xae4   :  { %v1226_v58 = vpop.f32.mrf.mxu0  ;;  %v1278_v59 = vpop.f32.mrf.mxu1 }
 0xae5   :  { %v1234_v62 = vmul.f32 %v1233_v7, %v1226_v58  ;;  %v1286_v6 = vmul.f32 %v1285_v60, %v1278_v59 }
 0xae6   :  { %v2428_v63 = vpop.f32.mrf.mxu0  ;;  %v2434_v3 = vpop.f32.mrf.mxu1 }
 0xae7   :  { %v1235_v4 = vadd.f32 %v1234_v62, %v1183_v61 }
 0xae8   :  { %v1229_v8 = vpop.f32.mrf.mxu0  ;;  %v1281_v9 = vpop.f32.mrf.mxu1 }
 0xae9   :  { %v1287_v10 = vadd.f32 %v1286_v6, %v1235_v4  ;;  %v1547_v8 = vstv %s2186_s26  ;;  %v1500_v9 = vstv %s2184_s27 }
 0xaea   :  { %v2429_v11 = vpop.f32.mrf.mxu0  ;;  %v2435_v12 = vpop.f32.mrf.mxu1 }
 0xaeb   :  { %vm1288_vm8 = vcmp.ge.f32.partialorder %v1287_v10, 0.0  ;;  %v1289_v13 = vmul.f32 0.01, %v1287_v10 }
 0xaed   :  { %v1290_v14 = vsel %vm1288_vm8, %v1287_v10, %v1289_v13 }
 0xaee   :  { %v1291_v15 = vsel %vm266_vm3, %v1290_v14, 0.0 }
 0xaef   :  { %1292 = vadd.xlane.f32.xlu0 %v1291_v15 }
 0xb78   :  { %v1293_v16 = vpop.xlane.xlu0 %1292 }
 0xb79   :  { %v1294_v17 = vmul.f32 0.0625, %v1293_v16  ;;  %v1591_v16 = vstv %s2188_s28 }
 0xb7b   :  { %2561 = vrcp.f32 %v1294_v17 }
 0xb88   :  { %v2562_v18 = vpop.eup %2561 }
 0xb89   :  { %v1296_v19 = vmul.f32 %v2562_v18, %v1290_v14 }
 0xb8b   :  { %v1297_v0 = vsel %vm266_vm3, %v1296_v19, 0.0 }
 0xb8c   :  { %1298 = vadd.xlane.f32.xlu1 %v1297_v0 }
 0xc15   :  { %v1299_v2 = vpop.xlane.xlu1 %1298 }
 0xc16   :  { %v1300_v20 = vmul.f32 0.0625, %v1299_v2 }
 0xc18   :  { %v1301_v21 = vsub.f32 %v1296_v19, %v1300_v20  ;;  %v1635_v20 = vstv %s2190_s29 }
 0xc1a   :  { %v1305_v22 = vpack.c.bf16 %v1301_v21, %v1301_v21  ;;  %v1304_v31 = vmul.f32 %v1303_v24, %v1301_v21  ;;  %v1679_v24 = vstv %s2192_s30 }
 0xc1c   :  { %2439 = vmatmul.mubr.msk.bf16.vlgmr.msra.gmra.mxu0 %vm56_vm1, %v1305_v22  ;;  %2445 = vmatmul.mubr.msk.bf16.vlgmr.msra.gmra.mxu1 %vm56_vm1, %v1305_v22 }
 0xc1d   :  { %2449 = vmatpush3.bf16.msra.mxu0 %v2797_v37  ;;  %2455 = vmatpush3.bf16.msra.mxu1 %v2799_v38 }
 0xc1e   :  { %2450 = vmatprep.mubr.msk.bf16.mxu0 %vm2634_vm0, %v2633_v1  ;;  %2456 = vmatprep.mubr.msk.bf16.mxu1 %vm2634_vm0, %v2633_v1 }
 0xc1f   :  { %2460 = vmatprep.subr.bf16.mxu0 %v2633_v1  ;;  %2466 = vmatprep.subr.bf16.mxu1 %v2633_v1 }
 0xc24   :  { %2451 = vmatmul.mubr.msk.bf16.vlgmr.msra.gmra.mxu0 %vm56_vm1, %v1305_v22  ;;  %2457 = vmatmul.mubr.msk.bf16.vlgmr.msra.gmra.mxu1 %vm56_vm1, %v1305_v22 }
 0xc25   :  { %2461 = vmatpush3.bf16.msra.mxu0 %v2788_v27  ;;  %2467 = vmatpush3.bf16.msra.mxu1 %v2793_v33 }
 0xc26   :  { %2462 = vmatprep.mubr.msk.bf16.mxu0 %vm2634_vm0, %v2633_v1  ;;  %2468 = vmatprep.mubr.msk.bf16.mxu1 %vm2634_vm0, %v2633_v1 }
 0xc27   :  { %2472 = vmatprep.subr.bf16.mxu0 %v2633_v1  ;;  %2478 = vmatprep.subr.bf16.mxu1 %v2633_v1 }
 0xcdc   :  { %v1343_v25 = vpop.f32.mrf.mxu0  ;;  %v1387_v26 = vpop.f32.mrf.mxu1 }
 0xcdd   :  { %v1351_v28 = vmul.f32 %v1350_v23, %v1343_v25  ;;  %v1395_v42 = vmul.f32 %v1394_v32, %v1387_v26 }
 0xcde   :  { %v2440_v29 = vpop.f32.mrf.mxu0  ;;  %v2446_v30 = vpop.f32.mrf.mxu1 }
 0xcdf   :  { %v1352_v36 = vadd.f32 %v1351_v28, %v1304_v31 }
 0xce0   :  { %v1346_v34 = vpop.f32.mrf.mxu0  ;;  %v1390_v35 = vpop.f32.mrf.mxu1 }
 0xce1   :  { %v1396_v46 = vadd.f32 %v1395_v42, %v1352_v36 }
 0xce2   :  { %v2441_v39 = vpop.f32.mrf.mxu0  ;;  %v2447_v40 = vpop.f32.mrf.mxu1 }
 0xce4   :  { %v1431_v43 = vpop.f32.mrf.mxu0  ;;  %v1475_v44 = vpop.f32.mrf.mxu1 }
 0xce5   :  { %v1439_v47 = vmul.f32 %v1438_v41, %v1431_v43  ;;  %v1483_v51 = vmul.f32 %v1482_v45, %v1475_v44 }
 0xce6   :  { %v2452_v48 = vpop.f32.mrf.mxu0  ;;  %v2458_v49 = vpop.f32.mrf.mxu1 }
 0xce7   :  { %v1440_v50 = vadd.f32 %v1439_v47, %v1396_v46 }
 0xce8   :  { %v1434_v52 = vpop.f32.mrf.mxu0  ;;  %v1478_v53 = vpop.f32.mrf.mxu1 }
 0xce9   :  { %v1484_v54 = vadd.f32 %v1483_v51, %v1440_v50  ;;  %v1744_v52 = vstv %s2195_s4  ;;  %v1697_v53 = vstv %s2193_s5 }
 0xcea   :  { %v2453_v55 = vpop.f32.mrf.mxu0  ;;  %v2459_v56 = vpop.f32.mrf.mxu1 }
 0xceb   :  { %vm1485_vm9 = vcmp.ge.f32.partialorder %v1484_v54, 0.0  ;;  %v1486_v5 = vmul.f32 0.01, %v1484_v54 }
 0xced   :  { %v1487_v7 = vsel %vm1485_vm9, %v1484_v54, %v1486_v5 }
 0xcee   :  { %v1488_v57 = vsel %vm266_vm3, %v1487_v7, 0.0 }
 0xcef   :  { %1489 = vadd.xlane.f32.xlu0 %v1488_v57 }
 0xd78   :  { %v1490_v58 = vpop.xlane.xlu0 %1489 }
 0xd79   :  { %v1491_v59 = vmul.f32 0.0625, %v1490_v58 }
 0xd7b   :  { %2563 = vrcp.f32 %v1491_v59 }
 0xd88   :  { %v2564_v60 = vpop.eup %2563 }
 0xd89   :  { %v1493_v61 = vmul.f32 %v2564_v60, %v1487_v7  ;;  %v1788_v7 = vstv %s2197_s6 }
 0xd8b   :  { %v1494_v62 = vsel %vm266_vm3, %v1493_v61, 0.0 }
 0xd8c   :  { %1495 = vadd.xlane.f32.xlu1 %v1494_v62  ;;  %v1832_v62 = vstv %s2199_s7 }
 0xe15   :  { %v1496_v63 = vpop.xlane.xlu1 %1495 }
 0xe16   :  { %v1497_v3 = vmul.f32 0.0625, %v1496_v63 }
 0xe18   :  { %v1498_v4 = vsub.f32 %v1493_v61, %v1497_v3 }
 0xe1a   :  { %v1502_v6 = vpack.c.bf16 %v1498_v4, %v1498_v4  ;;  %v1501_v15 = vmul.f32 %v1500_v9, %v1498_v4 }
 0xe1c   :  { %2463 = vmatmul.mubr.msk.bf16.vlgmr.msra.gmra.mxu0 %vm56_vm1, %v1502_v6  ;;  %2469 = vmatmul.mubr.msk.bf16.vlgmr.msra.gmra.mxu1 %vm56_vm1, %v1502_v6 }
 0xe1d   :  { %2473 = vmatpush3.bf16.msra.mxu0 %v2797_v37  ;;  %2479 = vmatpush3.bf16.msra.mxu1 %v2799_v38 }
 0xe1e   :  { %2474 = vmatprep.mubr.msk.bf16.mxu0 %vm2634_vm0, %v2633_v1  ;;  %2480 = vmatprep.mubr.msk.bf16.mxu1 %vm2634_vm0, %v2633_v1 }
 0xe1f   :  { %2484 = vmatprep.subr.bf16.mxu0 %v2633_v1  ;;  %2490 = vmatprep.subr.bf16.mxu1 %v2633_v1 }
 0xe24   :  { %2475 = vmatmul.mubr.msk.bf16.vlgmr.msra.gmra.mxu0 %vm56_vm1, %v1502_v6  ;;  %2481 = vmatmul.mubr.msk.bf16.vlgmr.msra.gmra.mxu1 %vm56_vm1, %v1502_v6  ;;  %v1876_v6 = vstv %s2201_s8 }
 0xe25   :  { %2485 = vmatpush3.bf16.msra.mxu0 %v2788_v27  ;;  %2491 = vmatpush3.bf16.msra.mxu1 %v2793_v33 }
 0xe26   :  { %2486 = vmatprep.mubr.msk.bf16.mxu0 %vm2634_vm0, %v2633_v1  ;;  %2492 = vmatprep.mubr.msk.bf16.mxu1 %vm2634_vm0, %v2633_v1 }
 0xe27   :  { %2496 = vmatprep.subr.bf16.mxu0 %v2633_v1  ;;  %2502 = vmatprep.subr.bf16.mxu1 %v2633_v1 }
 0xedc   :  { %v1540_v10 = vpop.f32.mrf.mxu0  ;;  %v1584_v11 = vpop.f32.mrf.mxu1 }
 0xedd   :  { %v1548_v12 = vmul.f32 %v1547_v8, %v1540_v10  ;;  %v1592_v21 = vmul.f32 %v1591_v16, %v1584_v11 }
 0xede   :  { %v2464_v13 = vpop.f32.mrf.mxu0  ;;  %v2470_v14 = vpop.f32.mrf.mxu1 }
 0xedf   :  { %v1549_v19 = vadd.f32 %v1548_v12, %v1501_v15 }
 0xee0   :  { %v1543_v17 = vpop.f32.mrf.mxu0  ;;  %v1587_v18 = vpop.f32.mrf.mxu1 }
 0xee1   :  { %v1593_v25 = vadd.f32 %v1592_v21, %v1549_v19 }
 0xee2   :  { %v2465_v0 = vpop.f32.mrf.mxu0  ;;  %v2471_v2 = vpop.f32.mrf.mxu1 }
 0xee4   :  { %v1628_v22 = vpop.f32.mrf.mxu0  ;;  %v1672_v23 = vpop.f32.mrf.mxu1 }
 0xee5   :  { %v1636_v26 = vmul.f32 %v1635_v20, %v1628_v22  ;;  %v1680_v31 = vmul.f32 %v1679_v24, %v1672_v23 }
 0xee6   :  { %v2476_v28 = vpop.f32.mrf.mxu0  ;;  %v2482_v29 = vpop.f32.mrf.mxu1 }
 0xee7   :  { %v1637_v30 = vadd.f32 %v1636_v26, %v1593_v25 }
 0xee8   :  { %v1631_v32 = vpop.f32.mrf.mxu0  ;;  %v1675_v34 = vpop.f32.mrf.mxu1 }
 0xee9   :  { %v1681_v35 = vadd.f32 %v1680_v31, %v1637_v30  ;;  %v1941_v30 = vstv %s2204_s9  ;;  %v1894_v31 = vstv %s2202_s10 }
 0xeea   :  { %v2477_v36 = vpop.f32.mrf.mxu0  ;;  %v2483_v39 = vpop.f32.mrf.mxu1 }
 0xeeb   :  { %vm1682_vm10 = vcmp.ge.f32.partialorder %v1681_v35, 0.0  ;;  %v1683_v40 = vmul.f32 0.01, %v1681_v35  ;;  %v1985_v39 = vstv %s2206_s11 }
 0xeed   :  { %v1684_v41 = vsel %vm1682_vm10, %v1681_v35, %v1683_v40 }
 0xeee   :  { %v1685_v42 = vsel %vm266_vm3, %v1684_v41, 0.0 }
 0xeef   :  { %1686 = vadd.xlane.f32.xlu0 %v1685_v42 }
 0xf78   :  { %v1687_v43 = vpop.xlane.xlu0 %1686 }
 0xf79   :  { %v1688_v44 = vmul.f32 0.0625, %v1687_v43 }
 0xf7b   :  { %2565 = vrcp.f32 %v1688_v44  ;;  %v2029_v44 = vstv %s2208_s12 }
 0xf88   :  { %v2566_v45 = vpop.eup %2565 }
 0xf89   :  { %v1690_v46 = vmul.f32 %v2566_v45, %v1684_v41 }
 0xf8b   :  { %v1691_v47 = vsel %vm266_vm3, %v1690_v46, 0.0 }
 0xf8c   :  { %1692 = vadd.xlane.f32.xlu1 %v1691_v47 }
0x1015   :  { %v1693_v48 = vpop.xlane.xlu1 %1692 }
0x1016   :  { %v1694_v49 = vmul.f32 0.0625, %v1693_v48  ;;  %v2073_v48 = vstv %s2210_s13 }
0x1018   :  { %v1695_v50 = vsub.f32 %v1690_v46, %v1694_v49 }
0x101a   :  { %v1699_v51 = vpack.c.bf16 %v1695_v50, %v1695_v50  ;;  %v1698_v5 = vmul.f32 %v1697_v53, %v1695_v50 }
0x101c   :  { %2487 = vmatmul.mubr.msk.bf16.vlgmr.msra.gmra.mxu0 %vm56_vm1, %v1699_v51  ;;  %2493 = vmatmul.mubr.msk.bf16.vlgmr.msra.gmra.mxu1 %vm56_vm1, %v1699_v51 }
0x101d   :  { %2497 = vmatpush3.bf16.msra.mxu0 %v2797_v37  ;;  %2503 = vmatpush3.bf16.msra.mxu1 %v2799_v38 }
0x101e   :  { %2498 = vmatprep.mubr.msk.bf16.mxu0 %vm2634_vm0, %v2633_v1  ;;  %2504 = vmatprep.mubr.msk.bf16.mxu1 %vm2634_vm0, %v2633_v1 }
0x101f   :  { %2508 = vmatprep.subr.bf16.mxu0 %v2633_v1  ;;  %2514 = vmatprep.subr.bf16.mxu1 %v2633_v1 }
0x1024   :  { %2499 = vmatmul.mubr.msk.bf16.vlgmr.msra.gmra.mxu0 %vm56_vm1, %v1699_v51  ;;  %2505 = vmatmul.mubr.msk.bf16.vlgmr.msra.gmra.mxu1 %vm56_vm1, %v1699_v51 }
0x1025   :  { %2509 = vmatpush3.bf16.msra.mxu0 %v2788_v27  ;;  %2515 = vmatpush3.bf16.msra.mxu1 %v2793_v33 }
0x1026   :  { %2510 = vmatprep.mubr.msk.bf16.mxu0 %vm2634_vm0, %v2633_v1  ;;  %2516 = vmatprep.mubr.msk.bf16.mxu1 %vm2634_vm0, %v2633_v1 }
0x1027   :  { %2520 = vmatprep.subr.bf16.mxu0 %v2633_v1  ;;  %2526 = vmatprep.subr.bf16.mxu1 %v2633_v1 }
0x10dc   :  { %v1737_v54 = vpop.f32.mrf.mxu0  ;;  %v1781_v27 = vpop.f32.mrf.mxu1 }
0x10dd   :  { %v1745_v33 = vmul.f32 %v1744_v52, %v1737_v54  ;;  %v1789_v63 = vmul.f32 %v1788_v7, %v1781_v27 }
0x10de   :  { %v2488_v55 = vpop.f32.mrf.mxu0  ;;  %v2494_v56 = vpop.f32.mrf.mxu1 }
0x10df   :  { %v1746_v59 = vadd.f32 %v1745_v33, %v1698_v5 }
0x10e0   :  { %v1740_v57 = vpop.f32.mrf.mxu0  ;;  %v1784_v58 = vpop.f32.mrf.mxu1 }
0x10e1   :  { %v1790_v8 = vadd.f32 %v1789_v63, %v1746_v59 }
0x10e2   :  { %v2489_v60 = vpop.f32.mrf.mxu0  ;;  %v2495_v61 = vpop.f32.mrf.mxu1 }
0x10e4   :  { %v1825_v3 = vpop.f32.mrf.mxu0  ;;  %v1869_v4 = vpop.f32.mrf.mxu1 }
0x10e5   :  { %v1833_v9 = vmul.f32 %v1832_v62, %v1825_v3  ;;  %v1877_v13 = vmul.f32 %v1876_v6, %v1869_v4 }
0x10e6   :  { %v2500_v10 = vpop.f32.mrf.mxu0  ;;  %v2506_v11 = vpop.f32.mrf.mxu1 }
0x10e7   :  { %v1834_v12 = vadd.f32 %v1833_v9, %v1790_v8 }
0x10e8   :  { %v1828_v14 = vpop.f32.mrf.mxu0  ;;  %v1872_v15 = vpop.f32.mrf.mxu1 }
0x10e9   :  { %v1878_v16 = vadd.f32 %v1877_v13, %v1834_v12 }
0x10ea   :  { %v2501_v17 = vpop.f32.mrf.mxu0  ;;  %v2507_v18 = vpop.f32.mrf.mxu1 }
0x10eb   :  { %vm1879_vm11 = vcmp.ge.f32.partialorder %v1878_v16, 0.0  ;;  %v1880_v19 = vmul.f32 0.01, %v1878_v16 }
0x10ed   :  { %v1881_v0 = vsel %vm1879_vm11, %v1878_v16, %v1880_v19 }
0x10ee   :  { %v1882_v2 = vsel %vm266_vm3, %v1881_v0, 0.0 }
0x10ef   :  { %1883 = vadd.xlane.f32.xlu0 %v1882_v2 }
0x1178   :  { %v1884_v20 = vpop.xlane.xlu0 %1883 }
0x1179   :  { %v1885_v21 = vmul.f32 0.0625, %v1884_v20 }
0x117b   :  { %2567 = vrcp.f32 %v1885_v21 }
0x1188   :  { %v2568_v22 = vpop.eup %2567 }
0x1189   :  { %v1887_v23 = vmul.f32 %v2568_v22, %v1881_v0 }
0x118b   :  { %v1888_v24 = vsel %vm266_vm3, %v1887_v23, 0.0 }
0x118c   :  { %1889 = vadd.xlane.f32.xlu1 %v1888_v24 }
0x1215   :  { %v1890_v25 = vpop.xlane.xlu1 %1889 }
0x1216   :  { %v1891_v26 = vmul.f32 0.0625, %v1890_v25 }
0x1218   :  { %v1892_v28 = vsub.f32 %v1887_v23, %v1891_v26 }
0x121a   :  { %v1896_v29 = vpack.c.bf16 %v1892_v28, %v1892_v28  ;;  %v1895_v36 = vmul.f32 %v1894_v31, %v1892_v28 }
0x121c   :  { %2511 = vmatmul.mubr.msk.bf16.vlgmr.msra.gmra.mxu0 %vm56_vm1, %v1896_v29  ;;  %2517 = vmatmul.mubr.msk.bf16.vlgmr.msra.gmra.mxu1 %vm56_vm1, %v1896_v29 }
0x121d   :  { %2521 = vmatpush3.bf16.msra.mxu0 %v2797_v37  ;;  %2527 = vmatpush3.bf16.msra.mxu1 %v2799_v38 }
0x121e   :  { %2522 = vmatprep.mubr.msk.bf16.mxu0 %vm2634_vm0, %v2633_v1  ;;  %2528 = vmatprep.mubr.msk.bf16.mxu1 %vm2634_vm0, %v2633_v1 }
0x1224   :  { %2523 = vmatmul.mubr.msk.bf16.vlgmr.msra.gmra.mxu0 %vm56_vm1, %v1896_v29  ;;  %2529 = vmatmul.mubr.msk.bf16.vlgmr.msra.gmra.mxu1 %vm56_vm1, %v1896_v29 }
0x12dc   :  { %v1934_v32 = vpop.f32.mrf.mxu0  ;;  %v1978_v37 = vpop.f32.mrf.mxu1 }
0x12dd   :  { %v1942_v38 = vmul.f32 %v1941_v30, %v1934_v32  ;;  %v1986_v45 = vmul.f32 %v1985_v39, %v1978_v37 }
0x12de   :  { %v2512_v34 = vpop.f32.mrf.mxu0  ;;  %v2518_v35 = vpop.f32.mrf.mxu1 }
0x12df   :  { %v1943_v41 = vadd.f32 %v1942_v38, %v1895_v36 }
0x12e0   :  { %v1937_v40 = vpop.f32.mrf.mxu0  ;;  %v1981_v1 = vpop.f32.mrf.mxu1 }
0x12e1   :  { %v1987_v49 = vadd.f32 %v1986_v45, %v1943_v41 }
0x12e2   :  { %v2513_v42 = vpop.f32.mrf.mxu0  ;;  %v2519_v43 = vpop.f32.mrf.mxu1 }
0x12e4   :  { %v2022_v46 = vpop.f32.mrf.mxu0  ;;  %v2066_v47 = vpop.f32.mrf.mxu1 }
0x12e5   :  { %v2030_v50 = vmul.f32 %v2029_v44, %v2022_v46  ;;  %v2074_v54 = vmul.f32 %v2073_v48, %v2066_v47 }
0x12e6   :  { %v2524_v51 = vpop.f32.mrf.mxu0  ;;  %v2530_v52 = vpop.f32.mrf.mxu1 }
0x12e7   :  { %v2031_v53 = vadd.f32 %v2030_v50, %v1987_v49 }
0x12e8   :  { %v2025_v27 = vpop.f32.mrf.mxu0  ;;  %v2069_v33 = vpop.f32.mrf.mxu1 }
0x12e9   :  { %v2075_v55 = vadd.f32 %v2074_v54, %v2031_v53 }
0x12ea   :  { %v2525_v56 = vpop.f32.mrf.mxu0  ;;  %v2531_v5 = vpop.f32.mrf.mxu1 }
0x12eb   :  { %vm2076_vm12 = vcmp.ge.f32.partialorder %v2075_v55, 0.0  ;;  %v2077_v7 = vmul.f32 0.01, %v2075_v55 }
0x12ed   :  { %v2078_v57 = vsel %vm2076_vm12, %v2075_v55, %v2077_v7 }
0x12ee   :  { %v2079_v58 = vsel %vm266_vm3, %v2078_v57, 0.0 }
0x12ef   :  { %2080 = vadd.xlane.f32.xlu0 %v2079_v58 }
0x1378   :  { %v2081_v59 = vpop.xlane.xlu0 %2080 }
0x1379   :  { %v2082_v60 = vmul.f32 0.0625, %v2081_v59 }
0x137b   :  { %2569 = vrcp.f32 %v2082_v60 }
0x1388   :  { %v2570_v61 = vpop.eup %2569 }
0x1389   :  { %v2084_v62 = vmul.f32 %v2570_v61, %v2078_v57 }
0x138b   :  { %v2085_v63 = vsel %vm266_vm3, %v2084_v62, 0.0 }
0x138c   :  { %2086 = vadd.xlane.f32.xlu1 %v2085_v63 }
0x1415   :  { %v2087_v3 = vpop.xlane.xlu1 %2086 }
0x1416   :  { %v2088_v4 = vmul.f32 0.0625, %v2087_v3 }
0x1418   :  { %v2089_v6 = vsub.f32 %v2084_v62, %v2088_v4 }
0x141a   :  { %v2211_v8 = vmul.f32 -1.442695, %v2089_v6 }
0x141c   :  { %2571 = vpow2.f32 %v2211_v8 }
0x1429   :  { %v2572_v9 = vpop.eup %2571 }
0x142a   :  { %v2093_v10 = vadd.f32 1.0, %v2572_v9 }
0x142c   :  { %2573 = vrcp.f32 %v2093_v10 }
0x1439   :  { %v2574_v11 = vpop.eup %2573 }
0x143a   :  { %2096 = vst.msk [vmem:[#allocation7 + $0x1] sm:$0x1] %vm266_vm3, %v2574_v11 }
0x143b   :  { %2614 = shalt.err (!%p2611_p9)
}
0x143c   :  { %2106 = dma.vmem_to_hbm [thread:$0]  %s2104_s15, 32, %s2909_s3, [#allocation4]  }
0x143d   :  { %2627 = dma.done.wait [#allocation4], 32  }
0x143e   :  { %2628 = vsyncadd [#allocation4], 4294967264 }
0x143f   :  { %2110 = vsyncpa [#allocation3], 1 }
0x1440   :  { %2111 = vsyncpa [#allocation4], 1 }
0x1441   :  { %2112 = vsyncpa [#allocation5], 1 }

</bundles_post_ra>
